<compile_context>
chip_gen: v7x
topology: tpu7x:2x2x1
jax: 0.10.0
libtpu: 0.0.40
codegen_flags: <defaults>
</compile_context>

<pallas_src>
import functools

import jax
import jax.numpy as jnp
from jax.experimental import pallas as pl
from jax.experimental.pallas import tpu as pltpu

BN_EPS = 1e-5

# Per-row VMEM footprint (bytes) of the gridless whole-batch kernel:
#   x f32 + h1 f32 + a1 bf16 + h2 f32 + out f32.
_GRIDLESS_ROW_BYTES = 128 * 4 + 1024 * 4 + 1024 * 2 + 256 * 4 + 4
_WEIGHT_BYTES = (128 * 1024 * 2 + 1024 * 256 * 2                    # w1, w2 (bf16)
                 + (1024 + 1024 + 256 + 256 + 256 + 1) * 4)         # BN/w3/b3 (f32)


def _vmem_cap_bytes():
    """~75% of this generation's per-core VMEM (v7x ~48 MiB, v5e/v6e ~96 MiB)."""
    try:
        cap = int(pltpu.get_tpu_info().vmem_capacity_bytes)
    except Exception:  # unknown generation / older JAX: be conservative
        cap = 64 * 2**20
    return (cap * 3) // 4


def _pick_batch_tile(batch, target):
    """Largest multiple of 8 that divides `batch` and is <= target."""
    if batch <= target:
        return batch
    t = (min(target, batch) // 8) * 8
    while t >= 8:
        if batch % t == 0:
            return t
        t -= 8
    # TODO(synk): ragged batches (no multiple-of-8 divisor) need a masked last
    # tile so padding rows don't pollute the training-mode batch statistics.
    return batch


def _bn_relu_fused(h, gamma, beta, inv_b):
    """Training-mode BatchNorm1d + ReLU fused into one scale/shift pass (f32)."""
    s = jnp.sum(h, axis=0, keepdims=True)
    sq = jnp.sum(h * h, axis=0, keepdims=True)
    mu = s * inv_b
    var = jnp.maximum(sq * inv_b - mu * mu, 0.0)   # biased batch variance
    scale = gamma * jax.lax.rsqrt(var + BN_EPS)    # rsqrt -> EUP slot
    shift = beta - mu * scale
    return jnp.maximum(h * scale + shift, 0.0)


# -------------------- gridless (whole batch in VMEM) kernel --------------------

def _gridless_kernel(x_ref,
                     w1_ref, g1_ref, be1_ref,
                     w2_ref, g2_ref, be2_ref,
                     w3_ref, b3_ref,
                     o_ref):
    inv_b = jnp.float32(1.0 / x_ref.shape[0])

    # Linear(128 -> 1024): bf16 x bf16 -> f32 acc; bias b1 exactly cancelled
    # by the BN mean subtraction, so it was dropped from the params entirely.
    x = x_ref[...].astype(jnp.bfloat16)            # in-kernel cast, no extra XLA op
    h1 = jnp.dot(x, w1_ref[...], preferred_element_type=jnp.float32)
    h1 = _bn_relu_fused(h1, g1_ref[...], be1_ref[...], inv_b)

    # Linear(1024 -> 256) + fused BN + ReLU.
    h2 = jnp.dot(h1.astype(jnp.bfloat16), w2_ref[...],
                 preferred_element_type=jnp.float32)
    h2 = _bn_relu_fused(h2, g2_ref[...], be2_ref[...], inv_b)

    # Linear(256 -> 1): VPU multiply + XLU lane-reduce (skip lane-sparse MXU).
    z = jnp.sum(h2 * w3_ref[...], axis=-1, keepdims=True) + b3_ref[...]
    o_ref[...] = z.astype(o_ref.dtype)             # (B, 1): 4 B/row writeback


# ---------------- batch-tiled kernel with global BN statistics ----------------

def _tiled_kernel(x_ref,
                  w1_ref, g1_ref, be1_ref,
                  w2_ref, g2_ref, be2_ref,
                  w3_ref, b3_ref,
                  o_ref,
                  s1, q1, s2, q2, sc1, sh1, sc2, sh2,
                  *, inv_b):
    p = pl.program_id(0)   # sweep: 0 = layer-1 stats, 1 = layer-2 stats, 2 = final
    t = pl.program_id(1)   # batch tile
    inv_b = jnp.float32(inv_b)

    @pl.when(jnp.logical_and(p == 0, t == 0))
    def _init():
        s1[...] = jnp.zeros_like(s1)
        q1[...] = jnp.zeros_like(q1)
        s2[...] = jnp.zeros_like(s2)
        q2[...] = jnp.zeros_like(q2)

    @pl.when(jnp.logical_and(p == 1, t == 0))
    def _finalize_bn1():
        mu = s1[...] * inv_b
        var = jnp.maximum(q1[...] * inv_b - mu * mu, 0.0)
        sc1[...] = g1_ref[...] * jax.lax.rsqrt(var + BN_EPS)
        sh1[...] = be1_ref[...] - mu * sc1[...]

    @pl.when(jnp.logical_and(p == 2, t == 0))
    def _finalize_bn2():
        mu = s2[...] * inv_b
        var = jnp.maximum(q2[...] * inv_b - mu * mu, 0.0)
        sc2[...] = g2_ref[...] * jax.lax.rsqrt(var + BN_EPS)
        sh2[...] = be2_ref[...] - mu * sc2[...]

    # Layer 1 is needed on every sweep (recompute instead of spilling to HBM).
    h1 = jnp.dot(x_ref[...].astype(jnp.bfloat16), w1_ref[...],
                 preferred_element_type=jnp.float32)

    @pl.when(p == 0)
    def _sweep0():
        s1[...] += jnp.sum(h1, axis=0, keepdims=True)
        q1[...] += jnp.sum(h1 * h1, axis=0, keepdims=True)
        o_ref[...] = jnp.zeros_like(o_ref)     # placeholder; overwritten on sweep 2

    @pl.when(p >= 1)
    def _sweep12():
        a1 = jnp.maximum(h1 * sc1[...] + sh1[...], 0.0)
        h2 = jnp.dot(a1.astype(jnp.bfloat16), w2_ref[...],
                     preferred_element_type=jnp.float32)

        @pl.when(p == 1)
        def _sweep1():
            s2[...] += jnp.sum(h2, axis=0, keepdims=True)
            q2[...] += jnp.sum(h2 * h2, axis=0, keepdims=True)
            o_ref[...] = jnp.zeros_like(o_ref)

        @pl.when(p == 2)
        def _sweep2():
            a2 = jnp.maximum(h2 * sc2[...] + sh2[...], 0.0)
            z = jnp.sum(a2 * w3_ref[...], axis=-1, keepdims=True) + b3_ref[...]
            o_ref[...] = z.astype(o_ref.dtype)


# -------------------------------- wrapper --------------------------------

def domain_classifier_forward(x, params, lambda_=1.0, *,
                              batch_tile=1024, force_tiled=False):
    """Pallas implementation of DomainClassifier.forward(x, lambda_).

    GRF is identity in the forward pass, so `lambda_` does not affect the
    forward output.
    """
    # TODO(synk): GRF gradient reversal (grad * -lambda_) needs a custom_vjp
    # around this call; this implementation is forward-only.
    del lambda_
    (w1, b1, g1, be1, w2, b2, g2, be2, w3, b3) = params
    del b1, b2  # exactly cancelled by training-mode BatchNorm mean subtraction
    B = x.shape[0]
    cap = _vmem_cap_bytes()
    vmem_spec = pl.BlockSpec(memory_space=pltpu.MemorySpace.VMEM)

    gridless_bytes = 2 * (_WEIGHT_BYTES + B * _GRIDLESS_ROW_BYTES)
    if not force_tiled and gridless_bytes <= cap:
        # Whole batch resident in VMEM: single fused pass, exact batch stats.
        cost = pl.CostEstimate(
            flops=2 * B * (128 * 1024 + 1024 * 256 + 256),
            transcendentals=1024 + 256,
            bytes_accessed=x.size * x.dtype.itemsize + _WEIGHT_BYTES + B * 4)
        return pl.pallas_call(
            _gridless_kernel,
            out_shape=jax.ShapeDtypeStruct((B, 1), jnp.float32),
            in_specs=[vmem_spec] * 9,
            out_specs=vmem_spec,
            compiler_params=pltpu.CompilerParams(
                vmem_limit_bytes=int(min(cap, max(16 * 2**20, gridless_bytes)))),
            cost_estimate=cost,
        )(x, w1, g1, be1, w2, g2, be2, w3, b3)

    # ---- batch-tiled path: exact *global* training-mode BN statistics ----
    tb = _pick_batch_tile(B, batch_tile)
    nb = B // tb
    kernel = functools.partial(_tiled_kernel, inv_b=1.0 / B)

    tile_bytes = 2 * (_WEIGHT_BYTES
                      + tb * (2 * 128 * 4 + 1024 * 4 + 1024 * 2 + 256 * 4 + 2 * 4))
    cost = pl.CostEstimate(
        flops=2 * B * (3 * 128 * 1024 + 2 * 1024 * 256 + 256),
        transcendentals=1024 + 256,
        bytes_accessed=3 * x.size * x.dtype.itemsize + _WEIGHT_BYTES + 3 * B * 4)

    grid_spec = pltpu.PrefetchScalarGridSpec(
        num_scalar_prefetch=0,
        grid=(3, nb),
        in_specs=[
            pl.BlockSpec((tb, 128), lambda p, t: (t, 0)),      # x tile
            pl.BlockSpec((128, 1024), lambda p, t: (0, 0)),    # w1 (resident)
            pl.BlockSpec((1, 1024), lambda p, t: (0, 0)),      # gamma1
            pl.BlockSpec((1, 1024), lambda p, t: (0, 0)),      # beta1
            pl.BlockSpec((1024, 256), lambda p, t: (0, 0)),    # w2 (resident)
            pl.BlockSpec((1, 256), lambda p, t: (0, 0)),       # gamma2
            pl.BlockSpec((1, 256), lambda p, t: (0, 0)),       # beta2
            pl.BlockSpec((1, 256), lambda p, t: (0, 0)),       # w3 row
            pl.BlockSpec((1, 1), lambda p, t: (0, 0)),         # b3
        ],
        out_specs=pl.BlockSpec((tb, 1), lambda p, t: (t, 0)),
        scratch_shapes=[
            pltpu.VMEM((1, 1024), jnp.float32),   # s1  (sum of h1)
            pltpu.VMEM((1, 1024), jnp.float32),   # q1  (sum of h1^2)
            pltpu.VMEM((1, 256), jnp.float32),    # s2
            pltpu.VMEM((1, 256), jnp.float32),    # q2
            pltpu.VMEM((1, 1024), jnp.float32),   # scale1
            pltpu.VMEM((1, 1024), jnp.float32),   # shift1
            pltpu.VMEM((1, 256), jnp.float32),    # scale2
            pltpu.VMEM((1, 256), jnp.float32),    # shift2
        ])

    return pl.pallas_call(
        kernel,
        out_shape=jax.ShapeDtypeStruct((B, 1), jnp.float32),
        grid_spec=grid_spec,
        compiler_params=pltpu.CompilerParams(
            dimension_semantics=("arbitrary", "arbitrary"),
            vmem_limit_bytes=int(min(cap, max(16 * 2**20, tile_bytes)))),
        cost_estimate=cost,
    )(x, w1, g1, be1, w2, g2, be2, w3, b3)


# ------------------------------ params / reference ------------------------------

def init_params(key):
    """Deterministic synthetic parameters with the shapes implied by __init__."""
    ks = jax.random.split(key, 6)

    def linear(kw, kb, fan_in, fan_out):
        # PyTorch default init: U(-1/sqrt(fan_in), 1/sqrt(fan_in)).  Weights
        # kept as (in, out) so the kernel computes y = x @ W.
        bound = 1.0 / jnp.sqrt(fan_in)
        w = jax.random.uniform(kw, (fan_in, fan_out), jnp.float32, -bound, bound)
        b = jax.random.uniform(kb, (1, fan_out), jnp.float32, -bound, bound)
        return w, b

    w1, b1 = linear(ks[0], ks[1], 128, 1024)
    w2, b2 = linear(ks[2], ks[3], 1024, 256)
    w3, b3 = linear(ks[4], ks[5], 256, 1)
    w3 = w3.T  # (1, 256) row: in-kernel VPU multiply + lane reduce

    # Pre-cast the big matmul weights to bf16 ONCE (MXU-native operands);
    # removes the per-call f32->bf16 weight-cast ops from the forward path.
    w1 = w1.astype(jnp.bfloat16)
    w2 = w2.astype(jnp.bfloat16)

    # BatchNorm1d affine params: gamma = 1, beta = 0 (PyTorch default).
    g1, be1 = jnp.ones((1, 1024), jnp.float32), jnp.zeros((1, 1024), jnp.float32)
    g2, be2 = jnp.ones((1, 256), jnp.float32), jnp.zeros((1, 256), jnp.float32)

    return (w1, b1, g1, be1, w2, b2, g2, be2, w3, b3)


def reference_forward(x, params):
    """Pure-JAX f32 reference (full PyTorch semantics, biases included)."""
    (w1, b1, g1, be1, w2, b2, g2, be2, w3, b3) = params
    w1 = w1.astype(jnp.float32)
    w2 = w2.astype(jnp.float32)

    def bn_relu(h, g, b):
        mu = jnp.mean(h, axis=0, keepdims=True)
        var = jnp.mean((h - mu) ** 2, axis=0, keepdims=True)
        return jnp.maximum((h - mu) / jnp.sqrt(var + BN_EPS) * g + b, 0.0)

    h = bn_relu(x @ w1 + b1, g1, be1)
    h = bn_relu(h @ w2 + b2, g2, be2)
    return h @ w3.T + b3  # w3 stored as a (1, 256) row


if __name__ == "__main__":
    key = jax.random.PRNGKey(0)
    kx, kx2, kp = jax.random.split(key, 3)
    params = init_params(kp)

    # Small batch: gridless whole-batch kernel (BatchNorm1d training needs B > 1).
    B = 8
    x = jax.random.normal(kx, (B, 128), dtype=jnp.float32)
    out = jax.block_until_ready(domain_classifier_forward(x, params, lambda_=0.5))
    ref = reference_forward(x, params)
    assert out.shape == (B, 1), out.shape
    assert jnp.allclose(out, ref, atol=5e-2, rtol=5e-2), (
        f"gridless max abs err = {jnp.max(jnp.abs(out - ref))}")

    # Large-batch design exercised at small scale: batch-tiled grid with
    # global training-mode BN statistics (3 sweeps x 2 tiles of 32 rows).
    B2 = 64
    x2 = jax.random.normal(kx2, (B2, 128), dtype=jnp.float32)
    out2 = jax.block_until_ready(
        domain_classifier_forward(x2, params, lambda_=0.5,
                                  force_tiled=True, batch_tile=32))
    ref2 = reference_forward(x2, params)
    assert out2.shape == (B2, 1), out2.shape
    assert jnp.allclose(out2, ref2, atol=5e-2, rtol=5e-2), (
        f"tiled max abs err = {jnp.max(jnp.abs(out2 - ref2))}")

    print("KERNEL_OK")
</pallas_src>

<mosaic_0001>
module attributes {stable_mosaic.version = 11 : i64} {
  func.func @_gridless_kernel(%arg0: memref<8x128xf32, #tpu.memory_space<vmem>>, %arg1: memref<128x1024xbf16, #tpu.memory_space<vmem>>, %arg2: memref<1x1024xf32, #tpu.memory_space<vmem>>, %arg3: memref<1x1024xf32, #tpu.memory_space<vmem>>, %arg4: memref<1024x256xbf16, #tpu.memory_space<vmem>>, %arg5: memref<1x256xf32, #tpu.memory_space<vmem>>, %arg6: memref<1x256xf32, #tpu.memory_space<vmem>>, %arg7: memref<1x256xf32, #tpu.memory_space<vmem>>, %arg8: memref<1x1xf32, #tpu.memory_space<vmem>>, %arg9: memref<8x1xf32, #tpu.memory_space<vmem>>) attributes {dimension_semantics = [], scalar_prefetch = 0 : i64, scratch_operands = 0 : i64, tpu.core_type = #tpu.core_type<tc>} {
    %c0 = arith.constant 0 : index
    %c0_0 = arith.constant 0 : index
    %0 = vector.load %arg0[%c0, %c0_0] : memref<8x128xf32, #tpu.memory_space<vmem>>, vector<8x128xf32>
    %1 = arith.truncf %0 : vector<8x128xf32> to vector<8x128xbf16>
    %c0_1 = arith.constant 0 : index
    %c0_2 = arith.constant 0 : index
    %2 = vector.load %arg1[%c0_1, %c0_2] : memref<128x1024xbf16, #tpu.memory_space<vmem>>, vector<128x1024xbf16>
    %cst = arith.constant dense<0.000000e+00> : vector<8x1024xf32>
    %3 = tpu.matmul %1, %2, %cst {dimension_numbers = #tpu.dot_dimension_numbers<[1], [0], [0], [1], [0, 0, 1, 1], [], []>} : vector<8x128xbf16>, vector<128x1024xbf16>, vector<8x1024xf32> -> vector<8x1024xf32>
    %c0_3 = arith.constant 0 : index
    %c0_4 = arith.constant 0 : index
    %4 = vector.load %arg2[%c0_3, %c0_4] : memref<1x1024xf32, #tpu.memory_space<vmem>>, vector<1x1024xf32>
    %c0_5 = arith.constant 0 : index
    %c0_6 = arith.constant 0 : index
    %5 = vector.load %arg3[%c0_5, %c0_6] : memref<1x1024xf32, #tpu.memory_space<vmem>>, vector<1x1024xf32>
    %cst_7 = arith.constant dense<0.000000e+00> : vector<1024xf32>
    %6 = vector.multi_reduction <add>, %3, %cst_7 [0] : vector<8x1024xf32> to vector<1024xf32>
    %7 = vector.shape_cast %6 : vector<1024xf32> to vector<1x1024xf32>
    %8 = arith.mulf %3, %3 : vector<8x1024xf32>
    %cst_8 = arith.constant dense<0.000000e+00> : vector<1024xf32>
    %9 = vector.multi_reduction <add>, %8, %cst_8 [0] : vector<8x1024xf32> to vector<1024xf32>
    %10 = vector.shape_cast %9 : vector<1024xf32> to vector<1x1024xf32>
    %cst_9 = arith.constant 1.250000e-01 : f32
    %11 = vector.broadcast %cst_9 : f32 to vector<1x1024xf32>
    %12 = arith.mulf %7, %11 : vector<1x1024xf32>
    %cst_10 = arith.constant 1.250000e-01 : f32
    %13 = vector.broadcast %cst_10 : f32 to vector<1x1024xf32>
    %14 = arith.mulf %10, %13 : vector<1x1024xf32>
    %15 = arith.mulf %12, %12 : vector<1x1024xf32>
    %16 = arith.subf %14, %15 : vector<1x1024xf32>
    %cst_11 = arith.constant 0.000000e+00 : f32
    %17 = vector.broadcast %cst_11 : f32 to vector<1x1024xf32>
    %18 = arith.maximumf %16, %17 : vector<1x1024xf32>
    %cst_12 = arith.constant 9.99999974E-6 : f32
    %19 = vector.broadcast %cst_12 : f32 to vector<1x1024xf32>
    %20 = arith.addf %18, %19 : vector<1x1024xf32>
    %21 = math.rsqrt %20 : vector<1x1024xf32>
    %22 = arith.mulf %4, %21 : vector<1x1024xf32>
    %23 = arith.mulf %12, %22 : vector<1x1024xf32>
    %24 = arith.subf %5, %23 : vector<1x1024xf32>
    %25 = vector.broadcast %22 : vector<1x1024xf32> to vector<8x1024xf32>
    %26 = arith.mulf %3, %25 : vector<8x1024xf32>
    %27 = vector.broadcast %24 : vector<1x1024xf32> to vector<8x1024xf32>
    %28 = arith.addf %26, %27 : vector<8x1024xf32>
    %cst_13 = arith.constant 0.000000e+00 : f32
    %29 = vector.broadcast %cst_13 : f32 to vector<8x1024xf32>
    %30 = arith.maximumf %28, %29 : vector<8x1024xf32>
    %31 = arith.truncf %30 : vector<8x1024xf32> to vector<8x1024xbf16>
    %c0_14 = arith.constant 0 : index
    %c0_15 = arith.constant 0 : index
    %32 = vector.load %arg4[%c0_14, %c0_15] : memref<1024x256xbf16, #tpu.memory_space<vmem>>, vector<1024x256xbf16>
    %cst_16 = arith.constant dense<0.000000e+00> : vector<8x256xf32>
    %33 = tpu.matmul %31, %32, %cst_16 {dimension_numbers = #tpu.dot_dimension_numbers<[1], [0], [0], [1], [0, 0, 1, 1], [], []>} : vector<8x1024xbf16>, vector<1024x256xbf16>, vector<8x256xf32> -> vector<8x256xf32>
    %c0_17 = arith.constant 0 : index
    %c0_18 = arith.constant 0 : index
    %34 = vector.load %arg5[%c0_17, %c0_18] : memref<1x256xf32, #tpu.memory_space<vmem>>, vector<1x256xf32>
    %c0_19 = arith.constant 0 : index
    %c0_20 = arith.constant 0 : index
    %35 = vector.load %arg6[%c0_19, %c0_20] : memref<1x256xf32, #tpu.memory_space<vmem>>, vector<1x256xf32>
    %cst_21 = arith.constant dense<0.000000e+00> : vector<256xf32>
    %36 = vector.multi_reduction <add>, %33, %cst_21 [0] : vector<8x256xf32> to vector<256xf32>
    %37 = vector.shape_cast %36 : vector<256xf32> to vector<1x256xf32>
    %38 = arith.mulf %33, %33 : vector<8x256xf32>
    %cst_22 = arith.constant dense<0.000000e+00> : vector<256xf32>
    %39 = vector.multi_reduction <add>, %38, %cst_22 [0] : vector<8x256xf32> to vector<256xf32>
    %40 = vector.shape_cast %39 : vector<256xf32> to vector<1x256xf32>
    %cst_23 = arith.constant 1.250000e-01 : f32
    %41 = vector.broadcast %cst_23 : f32 to vector<1x256xf32>
    %42 = arith.mulf %37, %41 : vector<1x256xf32>
    %cst_24 = arith.constant 1.250000e-01 : f32
    %43 = vector.broadcast %cst_24 : f32 to vector<1x256xf32>
    %44 = arith.mulf %40, %43 : vector<1x256xf32>
    %45 = arith.mulf %42, %42 : vector<1x256xf32>
    %46 = arith.subf %44, %45 : vector<1x256xf32>
    %cst_25 = arith.constant 0.000000e+00 : f32
    %47 = vector.broadcast %cst_25 : f32 to vector<1x256xf32>
    %48 = arith.maximumf %46, %47 : vector<1x256xf32>
    %cst_26 = arith.constant 9.99999974E-6 : f32
    %49 = vector.broadcast %cst_26 : f32 to vector<1x256xf32>
    %50 = arith.addf %48, %49 : vector<1x256xf32>
    %51 = math.rsqrt %50 : vector<1x256xf32>
    %52 = arith.mulf %34, %51 : vector<1x256xf32>
    %53 = arith.mulf %42, %52 : vector<1x256xf32>
    %54 = arith.subf %35, %53 : vector<1x256xf32>
    %55 = vector.broadcast %52 : vector<1x256xf32> to vector<8x256xf32>
    %56 = arith.mulf %33, %55 : vector<8x256xf32>
    %57 = vector.broadcast %54 : vector<1x256xf32> to vector<8x256xf32>
    %58 = arith.addf %56, %57 : vector<8x256xf32>
    %cst_27 = arith.constant 0.000000e+00 : f32
    %59 = vector.broadcast %cst_27 : f32 to vector<8x256xf32>
    %60 = arith.maximumf %58, %59 : vector<8x256xf32>
    %c0_28 = arith.constant 0 : index
    %c0_29 = arith.constant 0 : index
    %61 = vector.load %arg7[%c0_28, %c0_29] : memref<1x256xf32, #tpu.memory_space<vmem>>, vector<1x256xf32>
    %62 = vector.broadcast %61 : vector<1x256xf32> to vector<8x256xf32>
    %63 = arith.mulf %60, %62 : vector<8x256xf32>
    %cst_30 = arith.constant dense<0.000000e+00> : vector<8xf32>
    %64 = vector.multi_reduction <add>, %63, %cst_30 [1] : vector<8x256xf32> to vector<8xf32>
    %65 = vector.shape_cast %64 : vector<8xf32> to vector<8x1xf32>
    %c0_31 = arith.constant 0 : index
    %c0_32 = arith.constant 0 : index
    %66 = vector.load %arg8[%c0_31, %c0_32] : memref<1x1xf32, #tpu.memory_space<vmem>>, vector<1x1xf32>
    %67 = vector.broadcast %66 : vector<1x1xf32> to vector<8x1xf32>
    %68 = arith.addf %65, %67 : vector<8x1xf32>
    %c0_33 = arith.constant 0 : index
    %c0_34 = arith.constant 0 : index
    %69 = vector.load %arg9[%c0_33, %c0_34] : memref<8x1xf32, #tpu.memory_space<vmem>>, vector<8x1xf32>
    tpu.vector_store %arg9[%c0_33, %c0_34], %68 {strides = array<i32>} : memref<8x1xf32, #tpu.memory_space<vmem>>, vector<8x1xf32>,
    return
  }
}

</mosaic_0001>

<bundles_post_ra>
// kernel: tpu_custom_call.1
= control target key start
LH: loop header
LB: loop body
LE: loop exit
PB: predicated region body
PF: predicated region fallthrough
CT: control target
= control target key end

     0   :  { %s2918_s0 = inlined_call_operand.hbm [shape: f32[8,128], index: 0, kind: input, shape index: {}]   ;;  %s2919_s1 = inlined_call_operand.hbm [shape: bf16[128,1024], index: 1, kind: input, shape index: {}]   ;;  %s2920_s2 = inlined_call_operand.vmem [shape: f32[1,1024], index: 2, kind: input, shape index: {}]   ;;  %s2921_s3 = inlined_call_operand.hbm [shape: f32[1,1024], index: 3, kind: input, shape index: {}]   ;;  %s2922_s4 = inlined_call_operand.hbm [shape: bf16[1024,256], index: 4, kind: input, shape index: {}]   ;;  %s2923_s5 = inlined_call_operand.vmem [shape: f32[1,256], index: 5, kind: input, shape index: {}]   ;;  %s2924_s6 = inlined_call_operand.vmem [shape: f32[1,256], index: 6, kind: input, shape index: {}]   ;;  %s2925_s7 = inlined_call_operand.vmem [shape: f32[1,256], index: 7, kind: input, shape index: {}]   ;;  %s2926_s8 = inlined_call_operand.<no memory space> [shape: f32[1,1], index: 8, kind: input, shape index: {}]   ;;  %s2927_s9 = inlined_call_operand.vmem [shape: f32[8,1], index: 9, kind: output, shape index: {}]  }
   0x1   :  { %v14_v0 = vstv %s2926_s8 }
   0x2   :  { %15 = vst [vmem:[#allocation2] sm:$0x1] %v14_v0 }
   0x3   :  { %16 = vsyncpa [#allocation4], 0 }
   0x4   :  { %17 = vsyncpa [#allocation6], 0 }
   0x5   :  { %18 = vsyncpa [#allocation9], 0  ;;  %s2633_s11 = smov [#allocation5]   ;;  %s2539_s15 = scalar_lea.hbm %s2919_s1, 8192 }
   0x6   :  { %s34_s12 = sshll.u32 %s2633_s11, 4  ;;  %p2540_p0 = scmp.ne.s32.totalorder %s2919_s1, %s2539_s15  ;;  %s35_s12 = int_to_ptr.vmem [resolvable:$true] %s34_s12 }
   0x7   :  { %p2543_p1 = scmp.lt.u32.totalorder %s2539_s15, %s2919_s1 }
   0x9   :  { %p2545_p2 = pnand %p2543_p1, %p2540_p0 }
   0xb   :  { %2548 = shalt.err (!%p2545_p2)
}
   0xc   :  { %s2549_s8 = scalar_lea.vmem %s35_s12, 8192  ;;  %p2554_p4 = scmp.lt.s32.totalorder %s35_s12, %s35_s12 }
   0xd   :  { %p2550_p3 = scmp.ne.s32.totalorder %s35_s12, %s2549_s8  ;;  %p2555_p5 = scmp.lt.s32.totalorder %s2549_s8, %s2549_s8 }
   0xf   :  { %p2556_p6 = por %p2555_p5, %p2554_p4 }
  0x11   :  { %p2557_p7 = pnand %p2556_p6, %p2550_p3 }
  0x13   :  { %2560 = shalt.err (!%p2557_p7)
}
  0x14   :  { %s2634_s20 = smov 512   ;;  %s2635_s21 = smov 32  }
  0x15   :  { %40 = dma.hbm_to_vmem [thread:$0]  %s2919_s1, 8192, %s35_s12, [#allocation6], %s2634_s20, %s2634_s20, %s2635_s21  }
  0x16   :  { %s2636_s24 = smov [#allocation3]   ;;  %s2637_s26 = smov [#allocation7]  }
  0x17   :  { %s25_s25 = sshll.u32 %s2636_s24, 4  ;;  %s49_s27 = sshll.u32 %s2637_s26, 4  ;;  %s26_s25 = int_to_ptr.vmem [resolvable:$true] %s25_s25  ;;  %s50_s27 = int_to_ptr.vmem [resolvable:$true] %s49_s27 }
  0x18   :  { %s2561_s30 = scalar_lea.hbm %s2918_s0, 128 }
  0x19   :  { %p2562_p8 = scmp.ne.s32.totalorder %s2918_s0, %s2561_s30  ;;  %p2565_p9 = scmp.lt.u32.totalorder %s2561_s30, %s2918_s0 }
  0x1b   :  { %p2567_p10 = pnand %p2565_p9, %p2562_p8 }
  0x1d   :  { %2570 = shalt.err (!%p2567_p10)
}
  0x1e   :  { %s2571_s1 = scalar_lea.vmem %s26_s25, 128  ;;  %p2576_p12 = scmp.lt.s32.totalorder %s26_s25, %s26_s25 }
  0x1f   :  { %p2572_p11 = scmp.ne.s32.totalorder %s26_s25, %s2571_s1  ;;  %p2577_p13 = scmp.lt.s32.totalorder %s2571_s1, %s2571_s1 }
  0x21   :  { %p2578_p0 = por %p2577_p13, %p2576_p12 }
  0x23   :  { %p2579_p1 = pnand %p2578_p0, %p2572_p11 }
  0x25   :  { %2582 = shalt.err (!%p2579_p1)
}
  0x26   :  { %28 = dma.hbm_to_vmem [thread:$0]  %s2918_s0, 128, %s26_s25, [#allocation4]  }
  0x27   :  { %s2583_s18 = scalar_lea.hbm %s2921_s3, 128 }
  0x28   :  { %p2584_p2 = scmp.ne.s32.totalorder %s2921_s3, %s2583_s18  ;;  %p2587_p3 = scmp.lt.u32.totalorder %s2583_s18, %s2921_s3 }
  0x2a   :  { %p2589_p4 = pnand %p2587_p3, %p2584_p2 }
  0x2c   :  { %2592 = shalt.err (!%p2589_p4)
}
  0x2d   :  { %s2593_s22 = scalar_lea.vmem %s50_s27, 128  ;;  %p2598_p6 = scmp.lt.s32.totalorder %s50_s27, %s50_s27 }
  0x2e   :  { %p2594_p5 = scmp.ne.s32.totalorder %s50_s27, %s2593_s22  ;;  %p2599_p7 = scmp.lt.s32.totalorder %s2593_s22, %s2593_s22 }
  0x30   :  { %p2600_p8 = por %p2599_p7, %p2598_p6 }
  0x32   :  { %p2601_p9 = pnand %p2600_p8, %p2594_p5 }
  0x34   :  { %2604 = shalt.err (!%p2601_p9)
}
  0x35   :  { %52 = dma.hbm_to_vmem [thread:$0]  %s2921_s3, 128, %s50_s27, [#allocation6]  }
  0x36   :  { %s2638_s24 = smov [#allocation8]   ;;  %s2605_s29 = scalar_lea.hbm %s2922_s4, 16384 }
  0x37   :  { %s58_s25 = sshll.u32 %s2638_s24, 4  ;;  %p2606_p10 = scmp.ne.s32.totalorder %s2922_s4, %s2605_s29  ;;  %s59_s25 = int_to_ptr.vmem [resolvable:$true] %s58_s25 }
  0x38   :  { %p2609_p11 = scmp.lt.u32.totalorder %s2605_s29, %s2922_s4 }
  0x3a   :  { %p2611_p12 = pnand %p2609_p11, %p2606_p10 }
  0x3c   :  { %2614 = shalt.err (!%p2611_p12)
}
  0x3d   :  { %s2615_s14 = scalar_lea.vmem %s59_s25, 16384  ;;  %p2620_p0 = scmp.lt.s32.totalorder %s59_s25, %s59_s25 }
  0x3e   :  { %p2616_p13 = scmp.ne.s32.totalorder %s59_s25, %s2615_s14  ;;  %p2621_p1 = scmp.lt.s32.totalorder %s2615_s14, %s2615_s14 }
  0x40   :  { %p2622_p2 = por %p2621_p1, %p2620_p0 }
  0x42   :  { %p2623_p3 = pnand %p2622_p2, %p2616_p13 }
  0x44   :  { %2626 = shalt.err (!%p2623_p3)
}
  0x45   :  { %s2639_s3 = smov 128   ;;  %s2640_s27 = smov 8  }
  0x46   :  { %64 = dma.hbm_to_vmem [thread:$0]  %s2922_s4, 16384, %s59_s25, [#allocation9], %s2639_s3, %s2639_s3, %s2640_s27  }
  0x47   :  { %2627 = dma.done.wait [#allocation4], 128  }
  0x48   :  { %2628 = vsyncadd [#allocation4], 4294967168 }
  0x49   :  { %2629 = dma.done.wait [#allocation6], 8320  }
  0x4a   :  { %2630 = vsyncadd [#allocation6], 4294958976 }
  0x4b   :  { %2631 = dma.done.wait [#allocation9], 16384  }
  0x4c   :  { %2632 = vsyncadd [#allocation9], 4294950912  ;;  %v2641_v1 = vmov 0   ;;  %v88_v2 = vld [vmem:[#allocation5] sm:$0xff]  ;;  %v89_v4 = vld [vmem:[#allocation5 + $0x8] sm:$0xff]  ;;  %vm2105_vm0 = vcmask 7168  }
  0x4d   :  { %504 = vmatprep.mubr.bf16.mxu0 %v2641_v1  ;;  %545 = vmatprep.mubr.bf16.mxu1 %v2641_v1  ;;  %v92_v3 = vld [vmem:[#allocation5 + $0x20] sm:$0xff]  ;;  %v93_v6 = vld [vmem:[#allocation5 + $0x28] sm:$0xff]  ;;  %v90_v61 = vld [vmem:[#allocation5 + $0x10] sm:$0xff] }
  0x4e   :  { %v2115_v5 = vcombine.high %v88_v2, %v92_v3  ;;  %v2114_v7 = vcombine.low %v88_v2, %v92_v3  ;;  %v96_v8 = vld [vmem:[#allocation5 + $0x40] sm:$0xff]  ;;  %v2117_v10 = vcombine.high %v89_v4, %v93_v6  ;;  %v2116_v11 = vcombine.low %v89_v4, %v93_v6  ;;  %v97_v13 = vld [vmem:[#allocation5 + $0x48] sm:$0xff]  ;;  %v94_v62 = vld [vmem:[#allocation5 + $0x30] sm:$0xff] }
  0x4f   :  { %v100_v9 = vld [vmem:[#allocation5 + $0x60] sm:$0xff]  ;;  %v101_v14 = vld [vmem:[#allocation5 + $0x68] sm:$0xff]  ;;  %v91_v2 = vld [vmem:[#allocation5 + $0x18] sm:$0xff] }
  0x50   :  { %v2123_v12 = vcombine.high %v96_v8, %v100_v9  ;;  %v104_v15 = vld [vmem:[#allocation5 + $0x80] sm:$0xff]  ;;  %472 = vmatprep.subr.bf16.mxu0 %v2115_v5  ;;  %v2125_v16 = vcombine.high %v97_v13, %v101_v14  ;;  %v105_v18 = vld [vmem:[#allocation5 + $0x88] sm:$0xff]  ;;  %513 = vmatprep.subr.bf16.mxu1 %v2117_v10  ;;  %v2122_v20 = vcombine.low %v96_v8, %v100_v9  ;;  %v95_v3 = vld [vmem:[#allocation5 + $0x38] sm:$0xff] }
  0x51   :  { %v108_v17 = vld [vmem:[#allocation5 + $0xa0] sm:$0xff]  ;;  %v109_v19 = vld [vmem:[#allocation5 + $0xa8] sm:$0xff]  ;;  %473 = vmatpush1.bf16.msra.mxu0 %v2114_v7  ;;  %514 = vmatpush1.bf16.msra.mxu1 %v2116_v11  ;;  %v2124_v21 = vcombine.low %v97_v13, %v101_v14  ;;  %v86_v5 = vld [vmem:[#allocation3] sm:$0xff]  ;;  %v2119_v10 = vcombine.high %v90_v61, %v94_v62  ;;  %v2121_v13 = vcombine.high %v91_v2, %v95_v3 }
  0x52   :  { %474 = vmatprep.subr.bf16.mxu0 %v2123_v12  ;;  %v2131_v22 = vcombine.high %v104_v15, %v108_v17  ;;  %515 = vmatprep.subr.bf16.mxu1 %v2125_v16  ;;  %v2133_v23 = vcombine.high %v105_v18, %v109_v19  ;;  %v112_v24 = vld [vmem:[#allocation5 + $0xc0] sm:$0xff]  ;;  %v113_v26 = vld [vmem:[#allocation5 + $0xc8] sm:$0xff]  ;;  %v2130_v28 = vcombine.low %v104_v15, %v108_v17  ;;  %v98_v7 = vld [vmem:[#allocation5 + $0x50] sm:$0xff] }
  0x53   :  { %v116_v25 = vld [vmem:[#allocation5 + $0xe0] sm:$0xff]  ;;  %v117_v27 = vld [vmem:[#allocation5 + $0xe8] sm:$0xff]  ;;  %v2132_v29 = vcombine.low %v105_v18, %v109_v19  ;;  %v102_v8 = vld [vmem:[#allocation5 + $0x70] sm:$0xff]  ;;  %v2746_v14 = vpack.c.bf16 %v86_v5, %v86_v5  ;;  %v2118_v15 = vcombine.low %v90_v61, %v94_v62  ;;  %v2120_v18 = vcombine.low %v91_v2, %v95_v3 }
  0x54   :  { %v2139_v30 = vcombine.high %v112_v24, %v116_v25  ;;  %v2141_v31 = vcombine.high %v113_v26, %v117_v27  ;;  %v120_v32 = vld [vmem:[#allocation5 + $0x100] sm:$0xff]  ;;  %v121_v34 = vld [vmem:[#allocation5 + $0x108] sm:$0xff]  ;;  %v2138_v36 = vcombine.low %v112_v24, %v116_v25  ;;  %v2140_v37 = vcombine.low %v113_v26, %v117_v27  ;;  %v99_v11 = vld [vmem:[#allocation5 + $0x58] sm:$0xff] }
  0x55   :  { %475 = vmatpush1.bf16.msra.mxu0 %v2122_v20  ;;  %516 = vmatpush1.bf16.msra.mxu1 %v2124_v21  ;;  %v124_v33 = vld [vmem:[#allocation5 + $0x120] sm:$0xff]  ;;  %v125_v35 = vld [vmem:[#allocation5 + $0x128] sm:$0xff]  ;;  %v103_v12 = vld [vmem:[#allocation5 + $0x78] sm:$0xff]  ;;  %v2127_v19 = vcombine.high %v98_v7, %v102_v8 }
  0x56   :  { %476 = vmatprep.subr.bf16.mxu0 %v2131_v22  ;;  %517 = vmatprep.subr.bf16.mxu1 %v2133_v23  ;;  %v2147_v38 = vcombine.high %v120_v32, %v124_v33  ;;  %v2149_v39 = vcombine.high %v121_v34, %v125_v35  ;;  %v128_v40 = vld [vmem:[#allocation5 + $0x140] sm:$0xff]  ;;  %v129_v42 = vld [vmem:[#allocation5 + $0x148] sm:$0xff]  ;;  %v2146_v44 = vcombine.low %v120_v32, %v124_v33  ;;  %v106_v16 = vld [vmem:[#allocation5 + $0x90] sm:$0xff] }
  0x57   :  { %v132_v41 = vld [vmem:[#allocation5 + $0x160] sm:$0xff]  ;;  %v133_v43 = vld [vmem:[#allocation5 + $0x168] sm:$0xff]  ;;  %v2148_v45 = vcombine.low %v121_v34, %v125_v35  ;;  %v110_v17 = vld [vmem:[#allocation5 + $0xb0] sm:$0xff]  ;;  %v2129_v22 = vcombine.high %v99_v11, %v103_v12  ;;  %v2126_v23 = vcombine.low %v98_v7, %v102_v8  ;;  %v2128_v26 = vcombine.low %v99_v11, %v103_v12 }
  0x58   :  { %v2155_v46 = vcombine.high %v128_v40, %v132_v41  ;;  %v2157_v47 = vcombine.high %v129_v42, %v133_v43  ;;  %v136_v48 = vld [vmem:[#allocation5 + $0x180] sm:$0xff]  ;;  %v137_v50 = vld [vmem:[#allocation5 + $0x188] sm:$0xff]  ;;  %v2154_v52 = vcombine.low %v128_v40, %v132_v41  ;;  %v2156_v55 = vcombine.low %v129_v42, %v133_v43  ;;  %v107_v20 = vld [vmem:[#allocation5 + $0x98] sm:$0xff] }
  0x59   :  { %477 = vmatpush1.bf16.msra.mxu0 %v2130_v28  ;;  %518 = vmatpush1.bf16.msra.mxu1 %v2132_v29  ;;  %v140_v49 = vld [vmem:[#allocation5 + $0x1a0] sm:$0xff]  ;;  %v141_v51 = vld [vmem:[#allocation5 + $0x1a8] sm:$0xff]  ;;  %v111_v21 = vld [vmem:[#allocation5 + $0xb8] sm:$0xff]  ;;  %v2135_v27 = vcombine.high %v106_v16, %v110_v17 }
  0x5a   :  { %478 = vmatprep.subr.bf16.mxu0 %v2139_v30  ;;  %519 = vmatprep.subr.bf16.mxu1 %v2141_v31  ;;  %v144_v53 = vld [vmem:[#allocation5 + $0x1c0] sm:$0xff]  ;;  %v2163_v56 = vcombine.high %v136_v48, %v140_v49  ;;  %v145_v57 = vld [vmem:[#allocation5 + $0x1c8] sm:$0xff]  ;;  %v2165_v59 = vcombine.high %v137_v50, %v141_v51  ;;  %v2162_v60 = vcombine.low %v136_v48, %v140_v49  ;;  %v114_v24 = vld [vmem:[#allocation5 + $0xd0] sm:$0xff] }
  0x5b   :  { %v148_v54 = vld [vmem:[#allocation5 + $0x1e0] sm:$0xff]  ;;  %v149_v58 = vld [vmem:[#allocation5 + $0x1e8] sm:$0xff]  ;;  %v2164_v63 = vcombine.low %v137_v50, %v141_v51  ;;  %v118_v25 = vld [vmem:[#allocation5 + $0xf0] sm:$0xff]  ;;  %v2137_v30 = vcombine.high %v107_v20, %v111_v21  ;;  %v2134_v31 = vcombine.low %v106_v16, %v110_v17  ;;  %v2136_v34 = vcombine.low %v107_v20, %v111_v21 }
  0x5c   :  { %v2171_v0 = vcombine.high %v144_v53, %v148_v54  ;;  %v2173_v4 = vcombine.high %v145_v57, %v149_v58  ;;  %v2170_v6 = vcombine.low %v144_v53, %v148_v54  ;;  %v2172_v9 = vcombine.low %v145_v57, %v149_v58  ;;  %v115_v28 = vld [vmem:[#allocation5 + $0xd8] sm:$0xff]  ;;  %v122_v32 = vld [vmem:[#allocation5 + $0x110] sm:$0xff] }
  0x5d   :  { %479 = vmatpush1.bf16.msra.mxu0 %v2138_v36  ;;  %520 = vmatpush1.bf16.msra.mxu1 %v2140_v37  ;;  %v119_v29 = vld [vmem:[#allocation5 + $0xf8] sm:$0xff]  ;;  %v126_v33 = vld [vmem:[#allocation5 + $0x130] sm:$0xff]  ;;  %v2143_v35 = vcombine.high %v114_v24, %v118_v25 }
  0x5e   :  { %480 = vmatprep.subr.bf16.mxu0 %v2147_v38  ;;  %521 = vmatprep.subr.bf16.mxu1 %v2149_v39  ;;  %v123_v36 = vld [vmem:[#allocation5 + $0x118] sm:$0xff]  ;;  %v2145_v38 = vcombine.high %v115_v28, %v119_v29  ;;  %v2142_v39 = vcombine.low %v114_v24, %v118_v25  ;;  %v130_v40 = vld [vmem:[#allocation5 + $0x150] sm:$0xff]  ;;  %v2144_v42 = vcombine.low %v115_v28, %v119_v29 }
  0x5f   :  { %v127_v37 = vld [vmem:[#allocation5 + $0x138] sm:$0xff]  ;;  %v134_v41 = vld [vmem:[#allocation5 + $0x170] sm:$0xff] }
  0x60   :  { %v131_v43 = vld [vmem:[#allocation5 + $0x158] sm:$0xff]  ;;  %v142_v48 = vld [vmem:[#allocation5 + $0x1b0] sm:$0xff]  ;;  %v2152_v49 = vcombine.low %v123_v36, %v127_v37  ;;  %v2159_v50 = vcombine.high %v130_v40, %v134_v41  ;;  %v2158_v54 = vcombine.low %v130_v40, %v134_v41 }
  0x61   :  { %481 = vmatpush1.bf16.msra.mxu0 %v2146_v44  ;;  %522 = vmatpush1.bf16.msra.mxu1 %v2148_v45  ;;  %v135_v44 = vld [vmem:[#allocation5 + $0x178] sm:$0xff]  ;;  %v2153_v45 = vcombine.high %v123_v36, %v127_v37  ;;  %v2329_v5 = vld [vmem:[#allocation8 + $0x4] ss:$8 sps:$4 sm:$0xff]   ;;  %v2327_v7 = vld [vmem:[#allocation8] ss:$8 sps:$4 sm:$0xff]  }
  0x62   :  { %482 = vmatprep.subr.bf16.mxu0 %v2155_v46  ;;  %523 = vmatprep.subr.bf16.mxu1 %v2157_v47  ;;  %v2150_v46 = vcombine.low %v122_v32, %v126_v33  ;;  %v138_v47 = vld [vmem:[#allocation5 + $0x190] sm:$0xff]  ;;  %v139_v51 = vld [vmem:[#allocation5 + $0x198] sm:$0xff]  ;;  %v2161_v53 = vcombine.high %v131_v43, %v135_v44  ;;  %v2160_v57 = vcombine.low %v131_v43, %v135_v44 }
  0x63   :  { %v2167_v58 = vcombine.high %v138_v47, %v142_v48  ;;  %v2166_v62 = vcombine.low %v138_v47, %v142_v48  ;;  %v2330_v8 = vld [vmem:[#allocation8 + $0x200] ss:$8 sps:$4 sm:$0xff]   ;;  %v2333_v11 = vld [vmem:[#allocation8 + $0x10] ss:$8 sps:$4 sm:$0xff]   ;;  %v2347_v17 = vld [vmem:[#allocation8 + $0x34] ss:$8 sps:$4 sm:$0xff]  }
  0x64   :  { %v2336_v12 = vld [vmem:[#allocation8 + $0x210] ss:$8 sps:$4 sm:$0xff]   ;;  %v2339_v16 = vld [vmem:[#allocation8 + $0x20] ss:$8 sps:$4 sm:$0xff]   ;;  %v2353_v21 = vld [vmem:[#allocation8 + $0x44] ss:$8 sps:$4 sm:$0xff]  }
  0x65   :  { %483 = vmatpush1.bf16.msra.mxu0 %v2154_v52  ;;  %524 = vmatpush1.bf16.msra.mxu1 %v2156_v55  ;;  %v143_v52 = vld [vmem:[#allocation5 + $0x1b8] sm:$0xff]  ;;  %v146_v55 = vld [vmem:[#allocation5 + $0x1d0] sm:$0xff] }
  0x66   :  { %484 = vmatprep.subr.bf16.mxu0 %v2163_v56  ;;  %525 = vmatprep.subr.bf16.mxu1 %v2165_v59  ;;  %v150_v56 = vld [vmem:[#allocation5 + $0x1f0] sm:$0xff]  ;;  %v147_v59 = vld [vmem:[#allocation5 + $0x1d8] sm:$0xff]  ;;  %v2169_v61 = vcombine.high %v139_v51, %v143_v52 }
  0x67   :  { %v2174_v3 = vcombine.low %v146_v55, %v150_v56  ;;  %v2348_v20 = vld [vmem:[#allocation8 + $0x230] ss:$8 sps:$4 sm:$0xff]   ;;  %v2354_v24 = vld [vmem:[#allocation8 + $0x240] ss:$8 sps:$4 sm:$0xff]   ;;  %v2359_v25 = vld [vmem:[#allocation8 + $0x54] ss:$8 sps:$4 sm:$0xff]  }
  0x68   :  { %v2360_v28 = vld [vmem:[#allocation8 + $0x250] ss:$8 sps:$4 sm:$0xff]   ;;  %v2365_v29 = vld [vmem:[#allocation8 + $0x64] ss:$8 sps:$4 sm:$0xff]   ;;  %v2378_v40 = vld [vmem:[#allocation8 + $0x280] ss:$8 sps:$4 sm:$0xff]  }
  0x69   :  { %485 = vmatpush1.bf16.msra.mxu0 %v2162_v60  ;;  %526 = vmatpush1.bf16.msra.mxu1 %v2164_v63  ;;  %v151_v60 = vld [vmem:[#allocation5 + $0x1f8] sm:$0xff]  ;;  %v2168_v63 = vcombine.low %v139_v51, %v143_v52  ;;  %v2377_v37 = vld [vmem:[#allocation8 + $0x84] ss:$8 sps:$4 sm:$0xff]   ;;  %v2390_v47 = vld [vmem:[#allocation8 + $0x2a0] ss:$8 sps:$4 sm:$0xff]  }
  0x6a   :  { %486 = vmatprep.subr.bf16.mxu0 %v2171_v0  ;;  %527 = vmatprep.subr.bf16.mxu1 %v2173_v4  ;;  %v2175_v0 = vcombine.high %v146_v55, %v150_v56  ;;  %v2177_v2 = vcombine.high %v147_v59, %v151_v60  ;;  %v2176_v4 = vcombine.low %v147_v59, %v151_v60  ;;  %v2372_v36 = vld [vmem:[#allocation8 + $0x270] ss:$8 sps:$4 sm:$0xff]   ;;  %v2383_v41 = vld [vmem:[#allocation8 + $0x94] ss:$8 sps:$4 sm:$0xff]   ;;  %v2389_v44 = vld [vmem:[#allocation8 + $0xa4] ss:$8 sps:$4 sm:$0xff]  }
  0x6b   :  { %v2384_v43 = vld [vmem:[#allocation8 + $0x290] ss:$8 sps:$4 sm:$0xff]   ;;  %v2395_v48 = vld [vmem:[#allocation8 + $0xb4] ss:$8 sps:$4 sm:$0xff]   ;;  %v2401_v52 = vld [vmem:[#allocation8 + $0xc4] ss:$8 sps:$4 sm:$0xff]  }
  0x6c   :  { %v2396_v51 = vld [vmem:[#allocation8 + $0x2b0] ss:$8 sps:$4 sm:$0xff]   ;;  %v2402_v55 = vld [vmem:[#allocation8 + $0x2c0] ss:$8 sps:$4 sm:$0xff]   ;;  %v2410_v59 = vld [vmem:[#allocation8 + $0x2d4] ss:$8 sps:$4 sm:$0xff]  }
  0x6d   :  { %487 = vmatpush1.bf16.msra.mxu0 %v2170_v6  ;;  %528 = vmatpush1.bf16.msra.mxu1 %v2172_v9  ;;  %v2332_v6 = vld [vmem:[#allocation8 + $0x204] ss:$8 sps:$4 sm:$0xff]   ;;  %v2335_v9 = vld [vmem:[#allocation8 + $0x14] ss:$8 sps:$4 sm:$0xff]   ;;  %v2405_v56 = vld [vmem:[#allocation8 + $0xd0] ss:$8 sps:$4 sm:$0xff]  }
  0x6e   :  { %554 = vmatprep.subr.bf16.mxu0 %v2119_v10  ;;  %595 = vmatprep.subr.bf16.mxu1 %v2121_v13  ;;  %v2338_v10 = vld [vmem:[#allocation8 + $0x214] ss:$8 sps:$4 sm:$0xff]   ;;  %v2341_v13 = vld [vmem:[#allocation8 + $0x24] ss:$8 sps:$4 sm:$0xff]  }
  0x6f   :  { %v2413_v60 = vld [vmem:[#allocation8 + $0xe4] ss:$8 sps:$4 sm:$0xff]  }
  0x70   :  { %505 = vmatmul.mubr.bf16.vlgmr.msra.gmra.mrb[0].mxu0 %v2746_v14  ;;  %546 = vmatmul.mubr.bf16.vlgmr.msra.gmra.mrb[0].mxu1 %v2746_v14 }
  0x71   :  { %555 = vmatpush1.bf16.msra.mxu0 %v2118_v15  ;;  %596 = vmatpush1.bf16.msra.mxu1 %v2120_v18  ;;  %v2344_v15 = vld [vmem:[#allocation8 + $0x224] ss:$8 sps:$4 sm:$0xff]   ;;  %v2350_v18 = vld [vmem:[#allocation8 + $0x234] ss:$8 sps:$4 sm:$0xff]  }
  0x72   :  { %556 = vmatprep.subr.bf16.mxu0 %v2127_v19  ;;  %597 = vmatprep.subr.bf16.mxu1 %v2129_v22  ;;  %v2345_v19 = vld [vmem:[#allocation8 + $0x30] ss:$8 sps:$4 sm:$0xff]   ;;  %v2356_v22 = vld [vmem:[#allocation8 + $0x244] ss:$8 sps:$4 sm:$0xff]  }
  0x73   :  { %586 = vmatprep.mubr.bf16.mxu0 %v2641_v1  ;;  %627 = vmatprep.mubr.bf16.mxu1 %v2641_v1  ;;  %v2151_v1 = vcombine.high %v122_v32, %v126_v33  ;;  %v2366_v32 = vld [vmem:[#allocation8 + $0x260] ss:$8 sps:$4 sm:$0xff]   ;;  %v2371_v33 = vld [vmem:[#allocation8 + $0x74] ss:$8 sps:$4 sm:$0xff]  }
  0x75   :  { %557 = vmatpush1.bf16.msra.mxu0 %v2126_v23  ;;  %598 = vmatpush1.bf16.msra.mxu1 %v2128_v26  ;;  %v2351_v23 = vld [vmem:[#allocation8 + $0x40] ss:$8 sps:$4 sm:$0xff]   ;;  %v2362_v26 = vld [vmem:[#allocation8 + $0x254] ss:$8 sps:$4 sm:$0xff]  }
  0x76   :  { %558 = vmatprep.subr.bf16.mxu0 %v2135_v27  ;;  %599 = vmatprep.subr.bf16.mxu1 %v2137_v30  ;;  %v2357_v27 = vld [vmem:[#allocation8 + $0x50] ss:$8 sps:$4 sm:$0xff]   ;;  %v2368_v30 = vld [vmem:[#allocation8 + $0x264] ss:$8 sps:$4 sm:$0xff]  }
  0x79   :  { %559 = vmatpush1.bf16.msra.mxu0 %v2134_v31  ;;  %600 = vmatpush1.bf16.msra.mxu1 %v2136_v34  ;;  %v2363_v31 = vld [vmem:[#allocation8 + $0x60] ss:$8 sps:$4 sm:$0xff]   ;;  %v2374_v34 = vld [vmem:[#allocation8 + $0x274] ss:$8 sps:$4 sm:$0xff]  }
  0x7a   :  { %560 = vmatprep.subr.bf16.mxu0 %v2143_v35  ;;  %601 = vmatprep.subr.bf16.mxu1 %v2145_v38  ;;  %v2369_v35 = vld [vmem:[#allocation8 + $0x70] ss:$8 sps:$4 sm:$0xff]   ;;  %v2380_v38 = vld [vmem:[#allocation8 + $0x284] ss:$8 sps:$4 sm:$0xff]  }
  0x7d   :  { %561 = vmatpush1.bf16.msra.mxu0 %v2142_v39  ;;  %602 = vmatpush1.bf16.msra.mxu1 %v2144_v42  ;;  %v2375_v39 = vld [vmem:[#allocation8 + $0x80] ss:$8 sps:$4 sm:$0xff]   ;;  %v2386_v42 = vld [vmem:[#allocation8 + $0x294] ss:$8 sps:$4 sm:$0xff]  }
  0x7e   :  { %562 = vmatprep.subr.bf16.mxu0 %v2151_v1  ;;  %603 = vmatprep.subr.bf16.mxu1 %v2153_v45  ;;  %v2381_v1 = vld [vmem:[#allocation8 + $0x90] ss:$8 sps:$4 sm:$0xff]   ;;  %v2392_v45 = vld [vmem:[#allocation8 + $0x2a4] ss:$8 sps:$4 sm:$0xff]  }
  0x81   :  { %563 = vmatpush1.bf16.msra.mxu0 %v2150_v46  ;;  %604 = vmatpush1.bf16.msra.mxu1 %v2152_v49  ;;  %v2387_v46 = vld [vmem:[#allocation8 + $0xa0] ss:$8 sps:$4 sm:$0xff]   ;;  %v2398_v49 = vld [vmem:[#allocation8 + $0x2b4] ss:$8 sps:$4 sm:$0xff]  }
  0x82   :  { %564 = vmatprep.subr.bf16.mxu0 %v2159_v50  ;;  %605 = vmatprep.subr.bf16.mxu1 %v2161_v53  ;;  %v2393_v50 = vld [vmem:[#allocation8 + $0xb0] ss:$8 sps:$4 sm:$0xff]   ;;  %v2404_v53 = vld [vmem:[#allocation8 + $0x2c4] ss:$8 sps:$4 sm:$0xff]  }
  0x85   :  { %565 = vmatpush1.bf16.msra.mxu0 %v2158_v54  ;;  %606 = vmatpush1.bf16.msra.mxu1 %v2160_v57  ;;  %v2399_v54 = vld [vmem:[#allocation8 + $0xc0] ss:$8 sps:$4 sm:$0xff]   ;;  %v2407_v57 = vld [vmem:[#allocation8 + $0xd4] ss:$8 sps:$4 sm:$0xff]  }
  0x86   :  { %566 = vmatprep.subr.bf16.mxu0 %v2167_v58  ;;  %607 = vmatprep.subr.bf16.mxu1 %v2169_v61  ;;  %v2408_v58 = vld [vmem:[#allocation8 + $0x2d0] ss:$8 sps:$4 sm:$0xff]   ;;  %v2416_v61 = vld [vmem:[#allocation8 + $0x2e4] ss:$8 sps:$4 sm:$0xff]  }
  0x89   :  { %567 = vmatpush1.bf16.msra.mxu0 %v2166_v62  ;;  %608 = vmatpush1.bf16.msra.mxu1 %v2168_v63  ;;  %v2411_v62 = vld [vmem:[#allocation8 + $0xe0] ss:$8 sps:$4 sm:$0xff]  }
  0x8a   :  { %568 = vmatprep.subr.bf16.mxu0 %v2175_v0  ;;  %609 = vmatprep.subr.bf16.mxu1 %v2177_v2  ;;  %v2414_v63 = vld [vmem:[#allocation8 + $0x2e0] ss:$8 sps:$4 sm:$0xff]   ;;  %v2419_v0 = vld [vmem:[#allocation8 + $0xf4] ss:$8 sps:$4 sm:$0xff]  }
  0x8b   :  { %v2422_v2 = vld [vmem:[#allocation8 + $0x2f4] ss:$8 sps:$4 sm:$0xff]  }
  0x8d   :  { %569 = vmatpush1.bf16.msra.mxu0 %v2174_v3  ;;  %610 = vmatpush1.bf16.msra.mxu1 %v2176_v4  ;;  %v2417_v3 = vld [vmem:[#allocation8 + $0xf0] ss:$8 sps:$4 sm:$0xff]  }
  0x8e   :  { %1806 = vmatprep.subr.bf16.mxu1 %v2329_v5  ;;  %1888 = vmatprep.subr.bf16.mxu0 %v2332_v6  ;;  %v2420_v4 = vld [vmem:[#allocation8 + $0x2f0] ss:$8 sps:$4 sm:$0xff]   ;;  %v2425_v5 = vld [vmem:[#allocation8 + $0x104] ss:$8 sps:$4 sm:$0xff]  }
  0x8f   :  { %v2428_v6 = vld [vmem:[#allocation8 + $0x304] ss:$8 sps:$4 sm:$0xff]  }
  0x90   :  { %587 = vmatmul.mubr.bf16.vlgmr.msra.gmra.mrb[4].mxu0 %v2746_v14  ;;  %628 = vmatmul.mubr.bf16.vlgmr.msra.gmra.mrb[4].mxu1 %v2746_v14  ;;  %v2342_v14 = vld [vmem:[#allocation8 + $0x220] ss:$8 sps:$4 sm:$0xff]  }
  0x91   :  { %1807 = vmatpush1.bf16.msra.mxu1 %v2327_v7  ;;  %1889 = vmatpush1.bf16.msra.mxu0 %v2330_v8 }
  0x92   :  { %1808 = vmatprep.subr.bf16.mxu1 %v2335_v9  ;;  %1890 = vmatprep.subr.bf16.mxu0 %v2338_v10 }
  0x95   :  { %1809 = vmatpush1.bf16.msra.mxu1 %v2333_v11  ;;  %1891 = vmatpush1.bf16.msra.mxu0 %v2336_v12 }
  0x96   :  { %1810 = vmatprep.subr.bf16.mxu1 %v2341_v13  ;;  %1892 = vmatprep.subr.bf16.mxu0 %v2344_v15 }
  0x99   :  { %1811 = vmatpush1.bf16.msra.mxu1 %v2339_v16  ;;  %1893 = vmatpush1.bf16.msra.mxu0 %v2342_v14 }
  0x9a   :  { %1812 = vmatprep.subr.bf16.mxu1 %v2347_v17  ;;  %1894 = vmatprep.subr.bf16.mxu0 %v2350_v18 }
  0x9d   :  { %1813 = vmatpush1.bf16.msra.mxu1 %v2345_v19  ;;  %1895 = vmatpush1.bf16.msra.mxu0 %v2348_v20 }
  0x9e   :  { %1814 = vmatprep.subr.bf16.mxu1 %v2353_v21  ;;  %1896 = vmatprep.subr.bf16.mxu0 %v2356_v22 }
  0xa1   :  { %1815 = vmatpush1.bf16.msra.mxu1 %v2351_v23  ;;  %1897 = vmatpush1.bf16.msra.mxu0 %v2354_v24 }
  0xa2   :  { %1816 = vmatprep.subr.bf16.mxu1 %v2359_v25  ;;  %1898 = vmatprep.subr.bf16.mxu0 %v2362_v26 }
  0xa5   :  { %1817 = vmatpush1.bf16.msra.mxu1 %v2357_v27  ;;  %1899 = vmatpush1.bf16.msra.mxu0 %v2360_v28 }
  0xa6   :  { %1818 = vmatprep.subr.bf16.mxu1 %v2365_v29  ;;  %1900 = vmatprep.subr.bf16.mxu0 %v2368_v30 }
  0xa9   :  { %1819 = vmatpush1.bf16.msra.mxu1 %v2363_v31  ;;  %1901 = vmatpush1.bf16.msra.mxu0 %v2366_v32 }
  0xaa   :  { %1820 = vmatprep.subr.bf16.mxu1 %v2371_v33  ;;  %1902 = vmatprep.subr.bf16.mxu0 %v2374_v34 }
  0xad   :  { %1821 = vmatpush1.bf16.msra.mxu1 %v2369_v35  ;;  %1903 = vmatpush1.bf16.msra.mxu0 %v2372_v36 }
  0xae   :  { %1822 = vmatprep.subr.bf16.mxu1 %v2377_v37  ;;  %1904 = vmatprep.subr.bf16.mxu0 %v2380_v38 }
  0xb1   :  { %1823 = vmatpush1.bf16.msra.mxu1 %v2375_v39  ;;  %1905 = vmatpush1.bf16.msra.mxu0 %v2378_v40 }
  0xb2   :  { %1824 = vmatprep.subr.bf16.mxu1 %v2383_v41  ;;  %1906 = vmatprep.subr.bf16.mxu0 %v2386_v42 }
  0xb5   :  { %1825 = vmatpush1.bf16.msra.mxu1 %v2381_v1  ;;  %1907 = vmatpush1.bf16.msra.mxu0 %v2384_v43 }
  0xb6   :  { %1826 = vmatprep.subr.bf16.mxu1 %v2389_v44  ;;  %1908 = vmatprep.subr.bf16.mxu0 %v2392_v45 }
  0xb9   :  { %1827 = vmatpush1.bf16.msra.mxu1 %v2387_v46  ;;  %1909 = vmatpush1.bf16.msra.mxu0 %v2390_v47 }
  0xba   :  { %1828 = vmatprep.subr.bf16.mxu1 %v2395_v48  ;;  %1910 = vmatprep.subr.bf16.mxu0 %v2398_v49 }
  0xbd   :  { %1829 = vmatpush1.bf16.msra.mxu1 %v2393_v50  ;;  %1911 = vmatpush1.bf16.msra.mxu0 %v2396_v51 }
  0xbe   :  { %1830 = vmatprep.subr.bf16.mxu1 %v2401_v52  ;;  %1912 = vmatprep.subr.bf16.mxu0 %v2404_v53 }
  0xc1   :  { %1831 = vmatpush1.bf16.msra.mxu1 %v2399_v54  ;;  %1913 = vmatpush1.bf16.msra.mxu0 %v2402_v55 }
  0xc2   :  { %1832 = vmatprep.subr.bf16.mxu1 %v2407_v57  ;;  %1914 = vmatprep.subr.bf16.mxu0 %v2410_v59 }
  0xc5   :  { %1833 = vmatpush1.bf16.msra.mxu1 %v2405_v56  ;;  %1915 = vmatpush1.bf16.msra.mxu0 %v2408_v58 }
  0xc6   :  { %1834 = vmatprep.subr.bf16.mxu1 %v2413_v60  ;;  %1916 = vmatprep.subr.bf16.mxu0 %v2416_v61 }
  0xc9   :  { %1835 = vmatpush1.bf16.msra.mxu1 %v2411_v62  ;;  %1917 = vmatpush1.bf16.msra.mxu0 %v2414_v63 }
  0xca   :  { %1836 = vmatprep.subr.bf16.mxu1 %v2419_v0  ;;  %1918 = vmatprep.subr.bf16.mxu0 %v2422_v2 }
  0xcd   :  { %1837 = vmatpush1.bf16.msra.mxu1 %v2417_v3  ;;  %1919 = vmatpush1.bf16.msra.mxu0 %v2420_v4 }
  0xce   :  { %1847 = vmatprep.subr.bf16.mxu1 %v2425_v5  ;;  %1929 = vmatprep.subr.bf16.mxu0 %v2428_v6 }
 0x143   :  { %v2754_v7 = vpop.f32.mrb[0].mxu0  ;;  %v2759_v10 = vpop.f32.mrb[0].mxu1 }
 0x144   :  { %v638_v8 = vrot.slane %v2754_v7, 4  ;;  %v686_v9 = vmul.f32 %v2754_v7, %v2754_v7  ;;  %v2761_v11 = vpop.f32.mrb[1].mxu0  ;;  %v650_v12 = vrot.slane %v2759_v10, 4  ;;  %v688_v13 = vmul.f32 %v2759_v10, %v2759_v10  ;;  %v2769_v14 = vpop.f32.mrb[1].mxu1 }
 0x145   :  { %v644_v15 = vrot.slane %v2761_v11, 4  ;;  %v687_v16 = vmul.f32 %v2761_v11, %v2761_v11  ;;  %v510_v17 = vpop.f32.mrb[2].mxu0  ;;  %v656_v20 = vrot.slane %v2769_v14, 4  ;;  %v689_v21 = vmul.f32 %v2769_v14, %v2769_v14  ;;  %v551_v22 = vpop.f32.mrb[2].mxu1 }
 0x146   :  { %v639_v18 = vadd.f32 %v638_v8, %v2754_v7  ;;  %v694_v19 = vrot.slane %v686_v9, 4  ;;  %v511_v23 = vpop.f32.mrb[3].mxu0  ;;  %v651_v24 = vadd.f32 %v650_v12, %v2759_v10  ;;  %v706_v25 = vrot.slane %v688_v13, 4  ;;  %v552_v28 = vpop.f32.mrb[3].mxu1 }
 0x147   :  { %v645_v26 = vadd.f32 %v644_v15, %v2761_v11  ;;  %v700_v27 = vrot.slane %v687_v16, 4  ;;  %v657_v31 = vadd.f32 %v656_v20, %v2769_v14  ;;  %v712_v32 = vrot.slane %v689_v21, 4 }
 0x148   :  { %v640_v29 = vrot.slane %v639_v18, 2  ;;  %v695_v30 = vadd.f32 %v694_v19, %v686_v9  ;;  %v652_v33 = vrot.slane %v651_v24, 2  ;;  %v707_v34 = vadd.f32 %v706_v25, %v688_v13 }
 0x149   :  { %v646_v35 = vrot.slane %v645_v26, 2  ;;  %v701_v36 = vadd.f32 %v700_v27, %v687_v16  ;;  %v658_v39 = vrot.slane %v657_v31, 2  ;;  %v713_v40 = vadd.f32 %v712_v32, %v689_v21 }
 0x14a   :  { %v641_v37 = vadd.f32 %v640_v29, %v639_v18  ;;  %v696_v38 = vrot.slane %v695_v30, 2  ;;  %v653_v41 = vadd.f32 %v652_v33, %v651_v24  ;;  %v708_v42 = vrot.slane %v707_v34, 2 }
 0x14b   :  { %v647_v1 = vadd.f32 %v646_v35, %v645_v26  ;;  %v702_v43 = vrot.slane %v701_v36, 2  ;;  %v659_v46 = vadd.f32 %v658_v39, %v657_v31  ;;  %v714_v47 = vrot.slane %v713_v40, 2 }
 0x14c   :  { %v642_v44 = vrot.slane %v641_v37, 1  ;;  %v697_v45 = vadd.f32 %v696_v38, %v695_v30  ;;  %v654_v48 = vrot.slane %v653_v41, 1  ;;  %v709_v49 = vadd.f32 %v708_v42, %v707_v34 }
 0x14d   :  { %v648_v50 = vrot.slane %v647_v1, 1  ;;  %v703_v51 = vadd.f32 %v702_v43, %v701_v36  ;;  %v660_v54 = vrot.slane %v659_v46, 1  ;;  %v715_v55 = vadd.f32 %v714_v47, %v713_v40 }
 0x14e   :  { %v643_v52 = vadd.f32 %v642_v44, %v641_v37  ;;  %v698_v53 = vrot.slane %v697_v45, 1  ;;  %v655_v56 = vadd.f32 %v654_v48, %v653_v41  ;;  %v710_v57 = vrot.slane %v709_v49, 1 }
 0x14f   :  { %v649_v58 = vadd.f32 %v648_v50, %v647_v1  ;;  %v704_v59 = vrot.slane %v703_v51, 1  ;;  %v661_v62 = vadd.f32 %v660_v54, %v659_v46  ;;  %v716_v63 = vrot.slane %v715_v55, 1 }
 0x150   :  { %v699_v60 = vadd.f32 %v698_v53, %v697_v45  ;;  %v2778_v61 = vmul.f32 0.125, %v643_v52  ;;  %v711_v0 = vadd.f32 %v710_v57, %v709_v49  ;;  %v2780_v2 = vmul.f32 0.125, %v655_v56 }
 0x151   :  { %v705_v3 = vadd.f32 %v704_v59, %v703_v51  ;;  %v2782_v4 = vmul.f32 0.125, %v649_v58  ;;  %v717_v8 = vadd.f32 %v716_v63, %v715_v55  ;;  %v2786_v9 = vmul.f32 0.125, %v661_v62 }
 0x152   :  { %v750_v5 = vmul.f32 0.125, %v699_v60  ;;  %v758_v6 = vmul.f32 %v2778_v61, %v2778_v61  ;;  %v752_v12 = vmul.f32 0.125, %v711_v0  ;;  %v760_v13 = vmul.f32 %v2780_v2, %v2780_v2 }
 0x153   :  { %v751_v15 = vmul.f32 0.125, %v705_v3  ;;  %v759_v16 = vmul.f32 %v2782_v4, %v2782_v4  ;;  %v753_v18 = vmul.f32 0.125, %v717_v8  ;;  %v761_v19 = vmul.f32 %v2786_v9, %v2786_v9 }
 0x154   :  { %v766_v17 = vsub.f32 %v750_v5, %v758_v6  ;;  %v768_v20 = vsub.f32 %v752_v12, %v760_v13  ;;  %v2642_v31 = vmov 1966171168   ;;  %v813_v33 = vlaneseq }
 0x155   :  { %v767_v21 = vsub.f32 %v751_v15, %v759_v16  ;;  %v769_v23 = vsub.f32 %v753_v18, %v761_v19  ;;  %v811_v32 = vunpack.c.l.s4 %v2642_v31 }
 0x156   :  { %v774_v22 = vmax.f32 %v766_v17, 0.0  ;;  %v776_v24 = vmax.f32 %v768_v20, 0.0  ;;  %v2794_v35 = vshrl.u32 %v813_v33, 7 }
 0x157   :  { %v775_v25 = vmax.f32 %v767_v21, 0.0  ;;  %v777_v27 = vmax.f32 %v769_v23, 0.0  ;;  %v812_v34 = vunpack.c.0.s8 %v811_v32 }
 0x158   :  { %v782_v26 = vadd.f32 1e-05, %v774_v22  ;;  %v784_v28 = vadd.f32 1e-05, %v776_v24 }
 0x159   :  { %v783_v29 = vadd.f32 1e-05, %v775_v25  ;;  %v785_v30 = vadd.f32 1e-05, %v777_v27  ;;  %v2799_v38 = vsub.s32 %v812_v34, %v2794_v35 }
 0x15a   :  { %2519 = vrsqrt.f32 %v782_v26 }
 0x15b   :  { %2521 = vrsqrt.f32 %v784_v28 }
 0x15c   :  { %2523 = vrsqrt.f32 %v783_v29 }
 0x15d   :  { %2525 = vrsqrt.f32 %v785_v30 }
 0x163   :  { %v2796_v36 = vpop.f32.mrb[4].mxu0  ;;  %v2804_v41 = vpop.f32.mrb[4].mxu1 }
 0x164   :  { %v2520_v37 = vpop.eup %2519  ;;  %v662_v39 = vrot.slane %v2796_v36, 4  ;;  %v690_v40 = vmul.f32 %v2796_v36, %v2796_v36  ;;  %v2806_v42 = vpop.f32.mrb[5].mxu0  ;;  %v674_v43 = vrot.slane %v2804_v41, 4  ;;  %v692_v44 = vmul.f32 %v2804_v41, %v2804_v41 }
 0x165   :  { %v2522_v1 = vpop.eup %2521  ;;  %v668_v45 = vrot.slane %v2806_v42, 4  ;;  %v691_v46 = vmul.f32 %v2806_v42, %v2806_v42  ;;  %v2814_v47 = vpop.f32.mrb[5].mxu1 }
 0x166   :  { %v592_v48 = vpop.f32.mrb[6].mxu0  ;;  %v2524_v49 = vpop.eup %2523  ;;  %v663_v50 = vadd.f32 %v662_v39, %v2796_v36  ;;  %v718_v51 = vrot.slane %v690_v40, 4  ;;  %v680_v52 = vrot.slane %v2814_v47, 4  ;;  %v693_v53 = vmul.f32 %v2814_v47, %v2814_v47 }
 0x167   :  { %v633_v54 = vpop.f32.mrb[6].mxu1  ;;  %v593_v55 = vpop.f32.mrb[7].mxu0  ;;  %v806_v57 = vcombine.low %v2520_v37, %v2524_v49  ;;  %v675_v58 = vadd.f32 %v674_v43, %v2804_v41  ;;  %v730_v59 = vrot.slane %v692_v44, 4  ;;  %v669_v60 = vadd.f32 %v668_v45, %v2806_v42 }
 0x168   :  { %v2526_v56 = vpop.eup %2525  ;;  %v634_v62 = vpop.f32.mrb[7].mxu1  ;;  %v664_v0 = vrot.slane %v663_v50, 2  ;;  %v719_v3 = vadd.f32 %v718_v51, %v690_v40  ;;  %v724_v5 = vrot.slane %v691_v46, 4  ;;  %v681_v22 = vadd.f32 %v680_v52, %v2814_v47 }
 0x169   :  { %v807_v63 = vcombine.low %v2522_v1, %v2526_v56  ;;  %v2823_v6 = vrot.slane %v806_v57, %v2799_v38  ;;  %v676_v8 = vrot.slane %v675_v58, 2  ;;  %v731_v12 = vadd.f32 %v730_v59, %v692_v44 }
 0x16a   :  { %v670_v13 = vrot.slane %v669_v60, 2  ;;  %v665_v16 = vadd.f32 %v664_v0, %v663_v50  ;;  %v720_v17 = vrot.slane %v719_v3, 2  ;;  %v725_v18 = vadd.f32 %v724_v5, %v691_v46 }
 0x16b   :  { %v2826_v15 = vrot.slane %v807_v63, %v2799_v38  ;;  %v677_v19 = vadd.f32 %v676_v8, %v675_v58  ;;  %v732_v20 = vrot.slane %v731_v12, 2  ;;  %v682_v30 = vrot.slane %v681_v22, 2 }
 0x16c   :  { %v671_v21 = vadd.f32 %v670_v13, %v669_v60  ;;  %v666_v24 = vrot.slane %v665_v16, 1  ;;  %v721_v25 = vadd.f32 %v720_v17, %v719_v3  ;;  %v726_v26 = vrot.slane %v725_v18, 2 }
 0x16d   :  { %v838_v23 = vcombine.low %v2823_v6, %v2826_v15  ;;  %v678_v27 = vrot.slane %v677_v19, 1  ;;  %v733_v28 = vadd.f32 %v732_v20, %v731_v12  ;;  %v683_v40 = vadd.f32 %v682_v30, %v681_v22 }
 0x16e   :  { %v672_v29 = vrot.slane %v671_v21, 1  ;;  %v667_v31 = vadd.f32 %v666_v24, %v665_v16  ;;  %v722_v32 = vrot.slane %v721_v25, 1  ;;  %v727_v33 = vadd.f32 %v726_v26, %v725_v18 }
 0x16f   :  { %v679_v34 = vadd.f32 %v678_v27, %v677_v19  ;;  %v734_v37 = vrot.slane %v733_v28, 1  ;;  %v736_v45 = vrot.slane %v693_v53, 4  ;;  %v684_v50 = vrot.slane %v683_v40, 1 }
 0x170   :  { %v673_v39 = vadd.f32 %v672_v29, %v671_v21  ;;  %v723_v1 = vadd.f32 %v722_v32, %v721_v25  ;;  %v2831_v43 = vmul.f32 0.125, %v667_v31  ;;  %v728_v44 = vrot.slane %v727_v33, 1 }
 0x171   :  { %v735_v46 = vadd.f32 %v734_v37, %v733_v28  ;;  %v2833_v48 = vmul.f32 0.125, %v679_v34  ;;  %v737_v55 = vadd.f32 %v736_v45, %v693_v53  ;;  %v685_v59 = vadd.f32 %v684_v50, %v683_v40 }
 0x172   :  { %v2835_v49 = vmul.f32 0.125, %v673_v39  ;;  %v754_v51 = vmul.f32 0.125, %v723_v1  ;;  %v762_v52 = vmul.f32 %v2831_v43, %v2831_v43  ;;  %v729_v54 = vadd.f32 %v728_v44, %v727_v33  ;;  %v636_v1 = vld [vmem:[%s2920_s2] sm:$0xff] }
 0x173   :  { %v756_v56 = vmul.f32 0.125, %v735_v46  ;;  %v764_v57 = vmul.f32 %v2833_v48, %v2833_v48  ;;  %v738_v63 = vrot.slane %v737_v55, 2  ;;  %v749_v12 = vmul.f32 0.125, %v685_v59 }
 0x174   :  { %v763_v58 = vmul.f32 %v2835_v49, %v2835_v49  ;;  %v770_v60 = vsub.f32 %v754_v51, %v762_v52  ;;  %v755_v62 = vmul.f32 0.125, %v729_v54  ;;  %v846_v39 = vrot.slane %v838_v23, %v2799_v38 }
 0x175   :  { %v772_v0 = vsub.f32 %v756_v56, %v764_v57  ;;  %v739_v8 = vadd.f32 %v738_v63, %v737_v55  ;;  %v765_v20 = vmul.f32 %v749_v12, %v749_v12  ;;  %v876_v44 = vsub.s32 4, %v2794_v35 }
 0x176   :  { %v778_v3 = vmax.f32 %v770_v60, 0.0  ;;  %v771_v5 = vsub.f32 %v755_v62, %v763_v58  ;;  %v880_v46 = vsub.s32 5, %v2794_v35  ;;  %v884_v50 = vsub.s32 6, %v2794_v35 }
 0x177   :  { %v740_v17 = vrot.slane %v739_v8, 1  ;;  %v780_v53 = vmax.f32 %v772_v0, 0.0  ;;  %v888_v51 = vsub.s32 7, %v2794_v35  ;;  %v2858_v52 = vsub.s32 0, %v2794_v35 }
 0x178   :  { %v786_v13 = vadd.f32 1e-05, %v778_v3  ;;  %v779_v16 = vmax.f32 %v771_v5, 0.0  ;;  %v2861_v6 = vsub.s32 1, %v2794_v35  ;;  %v868_v15 = vsub.s32 2, %v2794_v35 }
 0x179   :  { %v741_v19 = vadd.f32 %v740_v17, %v739_v8  ;;  %v788_v22 = vadd.f32 1e-05, %v780_v53  ;;  %v872_v23 = vsub.s32 3, %v2794_v35 }
 0x17a   :  { %2527 = vrsqrt.f32 %v786_v13  ;;  %v787_v18 = vadd.f32 1e-05, %v779_v16 }
 0x17b   :  { %v757_v21 = vmul.f32 0.125, %v741_v19 }
 0x17c   :  { %2529 = vrsqrt.f32 %v787_v18 }
 0x17d   :  { %v773_v24 = vsub.f32 %v757_v21, %v765_v20  ;;  %2531 = vrsqrt.f32 %v788_v22 }
 0x17f   :  { %v781_v25 = vmax.f32 %v773_v24, 0.0 }
 0x181   :  { %v789_v26 = vadd.f32 1e-05, %v781_v25  ;;  %v637_v25 = vld [vmem:[#allocation7] sm:$0xff] }
 0x183   :  { %2533 = vrsqrt.f32 %v789_v26 }
 0x184   :  { %v2528_v27 = vpop.eup %2527 }
 0x186   :  { %v2530_v28 = vpop.eup %2529 }
 0x187   :  { %v808_v29 = vcombine.low %v2528_v27, %v2530_v28  ;;  %v2532_v30 = vpop.eup %2531 }
 0x189   :  { %v830_v32 = vrot.slane %v808_v29, %v2799_v38 }
 0x18d   :  { %v2534_v31 = vpop.eup %2533 }
 0x18e   :  { %v809_v33 = vcombine.low %v2532_v30, %v2534_v31 }
 0x190   :  { %v837_v34 = vrot.slane %v809_v33, %v2799_v38 }
 0x192   :  { %v839_v37 = vcombine.low %v830_v32, %v837_v34 }
 0x194   :  { %v853_v40 = vrot.slane %v839_v37, %v2799_v38 }
 0x196   :  { %v854_v45 = vcombine.low %v846_v39, %v853_v40 }
 0x198   :  { %v856_v54 = vmul.f32 %v854_v45, %v636_v1 }
 0x19a   :  { %v877_v55 = vrot.slane %v856_v54, %v876_v44  ;;  %v881_v56 = vrot.slane %v856_v54, %v880_v46  ;;  %v885_v57 = vrot.slane %v856_v54, %v884_v50  ;;  %v889_v58 = vrot.slane %v856_v54, %v888_v51 }
 0x19b   :  { %v861_v59 = vrot.slane %v856_v54, %v2858_v52  ;;  %v865_v60 = vrot.slane %v856_v54, %v2861_v6  ;;  %v869_v62 = vrot.slane %v856_v54, %v868_v15  ;;  %v873_v63 = vrot.slane %v856_v54, %v872_v23 }
 0x19c   :  { %v902_v0 = vmul.f32 %v877_v55, %v2831_v43  ;;  %v903_v3 = vmul.f32 %v881_v56, %v2835_v49  ;;  %v904_v5 = vmul.f32 %v885_v57, %v2833_v48  ;;  %v905_v8 = vmul.f32 %v889_v58, %v749_v12 }
 0x19d   :  { %v972_v35 = vmul.f32 %v889_v58, %v2814_v47  ;;  %v898_v13 = vmul.f32 %v861_v59, %v2778_v61  ;;  %v899_v16 = vmul.f32 %v865_v60, %v2782_v4  ;;  %v900_v17 = vmul.f32 %v869_v62, %v2780_v2 }
 0x19e   :  { %v916_v53 = vcombine.low %v902_v0, %v903_v3  ;;  %v917_v18 = vcombine.low %v904_v5, %v905_v8  ;;  %v901_v19 = vmul.f32 %v873_v63, %v2786_v9  ;;  %v966_v20 = vmul.f32 %v865_v60, %v2761_v11  ;;  %v2429_v5 = vld [vmem:[#allocation8 + $0x110] ss:$8 sps:$4 sm:$0xff]  }
 0x19f   :  { %v914_v43 = vcombine.low %v898_v13, %v899_v16  ;;  %v970_v49 = vmul.f32 %v881_v56, %v2806_v42  ;;  %v965_v48 = vmul.f32 %v861_v59, %v2754_v7  ;;  %v969_v12 = vmul.f32 %v877_v55, %v2796_v36  ;;  %v2432_v8 = vld [vmem:[#allocation8 + $0x310] ss:$8 sps:$4 sm:$0xff]   ;;  %v2440_v13 = vld [vmem:[#allocation8 + $0x324] ss:$8 sps:$4 sm:$0xff]   ;;  %v2435_v16 = vld [vmem:[#allocation8 + $0x120] ss:$8 sps:$4 sm:$0xff]  }
 0x1a0   :  { %v938_v47 = vrot.slane %v916_v53, %v2799_v38  ;;  %v945_v61 = vrot.slane %v917_v18, %v2799_v38  ;;  %v915_v4 = vcombine.low %v900_v17, %v901_v19  ;;  %v968_v2 = vmul.f32 %v873_v63, %v2769_v14  ;;  %v2434_v63 = vld [vmem:[#allocation8 + $0x314] ss:$8 sps:$4 sm:$0xff]   ;;  %v2438_v17 = vld [vmem:[#allocation8 + $0x320] ss:$8 sps:$4 sm:$0xff]   ;;  %v2441_v19 = vld [vmem:[#allocation8 + $0x130] ss:$8 sps:$4 sm:$0xff]  }
 0x1a1   :  { %v924_v21 = vrot.slane %v914_v43, %v2799_v38  ;;  %v967_v9 = vmul.f32 %v869_v62, %v2759_v10  ;;  %v971_v11 = vmul.f32 %v885_v57, %v2804_v41  ;;  %v2431_v62 = vld [vmem:[#allocation8 + $0x114] ss:$8 sps:$4 sm:$0xff]   ;;  %v2449_v43 = vld [vmem:[#allocation8 + $0x144] ss:$8 sps:$4 sm:$0xff]  }
 0x1a2   :  { %v947_v22 = vcombine.low %v938_v47, %v945_v61  ;;  %v931_v42 = vrot.slane %v915_v4, %v2799_v38  ;;  %v2443_v53 = vld [vmem:[#allocation8 + $0x134] ss:$8 sps:$4 sm:$0xff]   ;;  %v2453_v4 = vld [vmem:[#allocation8 + $0x150] ss:$8 sps:$4 sm:$0xff]  }
 0x1a3   :  { %v2446_v18 = vld [vmem:[#allocation8 + $0x334] ss:$8 sps:$4 sm:$0xff]  }
 0x1a4   :  { %v961_v7 = vrot.slane %v947_v22, %v2799_v38  ;;  %v946_v24 = vcombine.low %v924_v21, %v931_v42  ;;  %v2455_v47 = vld [vmem:[#allocation8 + $0x154] ss:$8 sps:$4 sm:$0xff]   ;;  %v2461_v21 = vld [vmem:[#allocation8 + $0x164] ss:$8 sps:$4 sm:$0xff]   ;;  %v2462_v22 = vld [vmem:[#allocation8 + $0x360] ss:$8 sps:$4 sm:$0xff]  }
 0x1a5   :  { %v2458_v61 = vld [vmem:[#allocation8 + $0x354] ss:$8 sps:$4 sm:$0xff]  }
 0x1a6   :  { %v954_v36 = vrot.slane %v946_v24, %v2799_v38  ;;  %v2467_v42 = vld [vmem:[#allocation8 + $0x174] ss:$8 sps:$4 sm:$0xff]   ;;  %v2465_v24 = vld [vmem:[#allocation8 + $0x170] ss:$8 sps:$4 sm:$0xff]  }
 0x1a8   :  { %v962_v26 = vcombine.low %v954_v36, %v961_v7  ;;  %v2470_v7 = vld [vmem:[#allocation8 + $0x374] ss:$8 sps:$4 sm:$0xff]   ;;  %v2468_v36 = vld [vmem:[#allocation8 + $0x370] ss:$8 sps:$4 sm:$0xff]  }
 0x1aa   :  { %v964_v27 = vsub.f32 %v637_v25, %v962_v26  ;;  %v2473_v25 = vld [vmem:[#allocation8 + $0x184] ss:$8 sps:$4 sm:$0xff]  }
 0x1ab   :  { %v2476_v26 = vld [vmem:[#allocation8 + $0x384] ss:$8 sps:$4 sm:$0xff]  }
 0x1ac   :  { %v981_v28 = vrot.slane %v964_v27, %v2861_v6  ;;  %v997_v14 = vrot.slane %v964_v27, %v880_v46  ;;  %v977_v29 = vrot.slane %v964_v27, %v2858_v52  ;;  %v993_v30 = vrot.slane %v964_v27, %v876_v44 }
 0x1ad   :  { %v989_v10 = vrot.slane %v964_v27, %v872_v23  ;;  %v1005_v31 = vrot.slane %v964_v27, %v888_v51  ;;  %v985_v41 = vrot.slane %v964_v27, %v868_v15  ;;  %v1001_v32 = vrot.slane %v964_v27, %v884_v50  ;;  %v2423_v51 = vld [vmem:[#allocation8 + $0x100] ss:$8 sps:$4 sm:$0xff]  }
 0x1ae   :  { %v1015_v33 = vadd.f32 %v981_v28, %v966_v20  ;;  %v1019_v34 = vadd.f32 %v997_v14, %v970_v49  ;;  %v1014_v37 = vadd.f32 %v977_v29, %v965_v48  ;;  %v1018_v39 = vadd.f32 %v993_v30, %v969_v12  ;;  %v2426_v50 = vld [vmem:[#allocation8 + $0x300] ss:$8 sps:$4 sm:$0xff]   ;;  %v2444_v20 = vld [vmem:[#allocation8 + $0x330] ss:$8 sps:$4 sm:$0xff]   ;;  %v2452_v49 = vld [vmem:[#allocation8 + $0x344] ss:$8 sps:$4 sm:$0xff]  }
 0x1af   :  { %v1017_v40 = vadd.f32 %v989_v10, %v968_v2  ;;  %v1021_v1 = vadd.f32 %v1005_v31, %v972_v35  ;;  %v2890_v45 = vadd.f32 %v985_v41, %v967_v9  ;;  %v2892_v54 = vadd.f32 %v1001_v32, %v971_v11  ;;  %v2437_v35 = vld [vmem:[#allocation8 + $0x124] ss:$8 sps:$4 sm:$0xff]   ;;  %v2447_v48 = vld [vmem:[#allocation8 + $0x140] ss:$8 sps:$4 sm:$0xff]   ;;  %v2456_v2 = vld [vmem:[#allocation8 + $0x350] ss:$8 sps:$4 sm:$0xff]  }
 0x1b0   :  { %v1023_v55 = vmax.f32 %v1015_v33, 0.0  ;;  %v1027_v56 = vmax.f32 %v1019_v34, 0.0  ;;  %v1022_v46 = vmax.f32 %v1014_v37, 0.0  ;;  %v1026_v57 = vmax.f32 %v1018_v39, 0.0  ;;  %v2450_v12 = vld [vmem:[#allocation8 + $0x340] ss:$8 sps:$4 sm:$0xff]  }
 0x1b1   :  { %v1025_v58 = vmax.f32 %v1017_v40, 0.0  ;;  %v1029_v44 = vmax.f32 %v1021_v1, 0.0  ;;  %v2464_v9 = vld [vmem:[#allocation8 + $0x364] ss:$8 sps:$4 sm:$0xff]   ;;  %v2459_v11 = vld [vmem:[#allocation8 + $0x160] ss:$8 sps:$4 sm:$0xff]  }
 0x1b2   :  { %v1031_v23 = vpack.c.bf16 %v1023_v55, %v1023_v55  ;;  %v1035_v15 = vpack.c.bf16 %v1027_v56, %v1027_v56  ;;  %v1030_v59 = vpack.c.bf16 %v1022_v46, %v1022_v46  ;;  %v1034_v60 = vpack.c.bf16 %v1026_v57, %v1026_v57  ;;  %v2471_v27 = vld [vmem:[#allocation8 + $0x180] ss:$8 sps:$4 sm:$0xff]   ;;  %v2479_v14 = vld [vmem:[#allocation8 + $0x194] ss:$8 sps:$4 sm:$0xff]   ;;  %v2477_v30 = vld [vmem:[#allocation8 + $0x190] ss:$8 sps:$4 sm:$0xff]  }
 0x1b3   :  { %v1033_v0 = vpack.c.bf16 %v1025_v58, %v1025_v58  ;;  %v1037_v3 = vpack.c.bf16 %v1029_v44, %v1029_v44  ;;  %v2474_v28 = vld [vmem:[#allocation8 + $0x380] ss:$8 sps:$4 sm:$0xff]   ;;  %v2482_v29 = vld [vmem:[#allocation8 + $0x394] ss:$8 sps:$4 sm:$0xff]   ;;  %v2480_v10 = vld [vmem:[#allocation8 + $0x390] ss:$8 sps:$4 sm:$0xff]  }
 0x1b4   :  { %1838 = vmatprep.mubr.bf16.mxu1 %v1031_v23  ;;  %1920 = vmatprep.mubr.bf16.mxu0 %v1035_v15  ;;  %v2485_v31 = vld [vmem:[#allocation8 + $0x1a4] ss:$8 sps:$4 sm:$0xff]   ;;  %v2483_v32 = vld [vmem:[#allocation8 + $0x1a0] ss:$8 sps:$4 sm:$0xff]   ;;  %v2491_v34 = vld [vmem:[#allocation8 + $0x1b4] ss:$8 sps:$4 sm:$0xff]  }
 0x1b5   :  { %1839 = vmatmul.mubr.bf16.vlgmr.msra.gmra.mrb[8].mxu1 %v1030_v59  ;;  %1921 = vmatmul.mubr.bf16.vlgmr.msra.gmra.mrb[8].mxu0 %v1034_v60  ;;  %v2488_v41 = vld [vmem:[#allocation8 + $0x3a4] ss:$8 sps:$4 sm:$0xff]   ;;  %v2486_v33 = vld [vmem:[#allocation8 + $0x3a0] ss:$8 sps:$4 sm:$0xff]   ;;  %v2494_v37 = vld [vmem:[#allocation8 + $0x3b4] ss:$8 sps:$4 sm:$0xff]  }
 0x1b6   :  { %1848 = vmatpush1.bf16.msra.mxu1 %v2423_v51  ;;  %1930 = vmatpush1.bf16.msra.mxu0 %v2426_v50  ;;  %v2489_v39 = vld [vmem:[#allocation8 + $0x1b0] ss:$8 sps:$4 sm:$0xff]   ;;  %v2497_v1 = vld [vmem:[#allocation8 + $0x1c4] ss:$8 sps:$4 sm:$0xff]   ;;  %v2495_v56 = vld [vmem:[#allocation8 + $0x1c0] ss:$8 sps:$4 sm:$0xff]  }
 0x1b7   :  { %1879 = vmatprep.mubr.bf16.mxu1 %v1033_v0  ;;  %1961 = vmatprep.mubr.bf16.mxu0 %v1037_v3  ;;  %v2492_v40 = vld [vmem:[#allocation8 + $0x3b0] ss:$8 sps:$4 sm:$0xff]   ;;  %v2500_v55 = vld [vmem:[#allocation8 + $0x3c4] ss:$8 sps:$4 sm:$0xff]   ;;  %v2498_v46 = vld [vmem:[#allocation8 + $0x3c0] ss:$8 sps:$4 sm:$0xff]  }
 0x1b8   :  { %1849 = vmatprep.subr.bf16.mxu1 %v2431_v62  ;;  %1931 = vmatprep.subr.bf16.mxu0 %v2434_v63  ;;  %v2503_v57 = vld [vmem:[#allocation8 + $0x1d4] ss:$8 sps:$4 sm:$0xff]   ;;  %v2501_v44 = vld [vmem:[#allocation8 + $0x1d0] ss:$8 sps:$4 sm:$0xff]   ;;  %v2509_v51 = vld [vmem:[#allocation8 + $0x1e4] ss:$8 sps:$4 sm:$0xff]  }
 0x1b9   :  { %v2506_v58 = vld [vmem:[#allocation8 + $0x3d4] ss:$8 sps:$4 sm:$0xff]   ;;  %v2504_v23 = vld [vmem:[#allocation8 + $0x3d0] ss:$8 sps:$4 sm:$0xff]   ;;  %v2512_v15 = vld [vmem:[#allocation8 + $0x3e4] ss:$8 sps:$4 sm:$0xff]  }
 0x1ba   :  { %1850 = vmatpush1.bf16.msra.mxu1 %v2429_v5  ;;  %1932 = vmatpush1.bf16.msra.mxu0 %v2432_v8  ;;  %v2507_v50 = vld [vmem:[#allocation8 + $0x1e0] ss:$8 sps:$4 sm:$0xff]   ;;  %v2515_v60 = vld [vmem:[#allocation8 + $0x1f4] ss:$8 sps:$4 sm:$0xff]   ;;  %v2513_v63 = vld [vmem:[#allocation8 + $0x1f0] ss:$8 sps:$4 sm:$0xff]  }
 0x1bb   :  { %1851 = vmatprep.subr.bf16.mxu1 %v2437_v35  ;;  %1933 = vmatprep.subr.bf16.mxu0 %v2440_v13  ;;  %v2510_v59 = vld [vmem:[#allocation8 + $0x3e0] ss:$8 sps:$4 sm:$0xff]   ;;  %v2518_v62 = vld [vmem:[#allocation8 + $0x3f4] ss:$8 sps:$4 sm:$0xff]   ;;  %v2516_v0 = vld [vmem:[#allocation8 + $0x3f0] ss:$8 sps:$4 sm:$0xff]  }
 0x1bc   :  { %v1024_v3 = vmax.f32 %v2890_v45, 0.0  ;;  %v1028_v5 = vmax.f32 %v2892_v54, 0.0 }
 0x1be   :  { %1852 = vmatpush1.bf16.msra.mxu1 %v2435_v16  ;;  %1934 = vmatpush1.bf16.msra.mxu0 %v2438_v17  ;;  %v1032_v8 = vpack.c.bf16 %v1024_v3, %v1024_v3  ;;  %v1036_v35 = vpack.c.bf16 %v1028_v5, %v1028_v5 }
 0x1bf   :  { %1853 = vmatprep.subr.bf16.mxu1 %v2443_v53  ;;  %1935 = vmatprep.subr.bf16.mxu0 %v2446_v18 }
 0x1c2   :  { %1854 = vmatpush1.bf16.msra.mxu1 %v2441_v19  ;;  %1936 = vmatpush1.bf16.msra.mxu0 %v2444_v20 }
 0x1c3   :  { %1855 = vmatprep.subr.bf16.mxu1 %v2449_v43  ;;  %1937 = vmatprep.subr.bf16.mxu0 %v2452_v49 }
 0x1c6   :  { %1856 = vmatpush1.bf16.msra.mxu1 %v2447_v48  ;;  %1938 = vmatpush1.bf16.msra.mxu0 %v2450_v12 }
 0x1c7   :  { %1857 = vmatprep.subr.bf16.mxu1 %v2455_v47  ;;  %1939 = vmatprep.subr.bf16.mxu0 %v2458_v61 }
 0x1ca   :  { %1858 = vmatpush1.bf16.msra.mxu1 %v2453_v4  ;;  %1940 = vmatpush1.bf16.msra.mxu0 %v2456_v2 }
 0x1cb   :  { %1859 = vmatprep.subr.bf16.mxu1 %v2461_v21  ;;  %1941 = vmatprep.subr.bf16.mxu0 %v2464_v9 }
 0x1ce   :  { %1860 = vmatpush1.bf16.msra.mxu1 %v2459_v11  ;;  %1942 = vmatpush1.bf16.msra.mxu0 %v2462_v22 }
 0x1cf   :  { %1861 = vmatprep.subr.bf16.mxu1 %v2467_v42  ;;  %1943 = vmatprep.subr.bf16.mxu0 %v2470_v7 }
 0x1d2   :  { %1862 = vmatpush1.bf16.msra.mxu1 %v2465_v24  ;;  %1944 = vmatpush1.bf16.msra.mxu0 %v2468_v36 }
 0x1d3   :  { %1863 = vmatprep.subr.bf16.mxu1 %v2473_v25  ;;  %1945 = vmatprep.subr.bf16.mxu0 %v2476_v26 }
 0x1d6   :  { %1864 = vmatpush1.bf16.msra.mxu1 %v2471_v27  ;;  %1946 = vmatpush1.bf16.msra.mxu0 %v2474_v28 }
 0x1d7   :  { %1865 = vmatprep.subr.bf16.mxu1 %v2479_v14  ;;  %1947 = vmatprep.subr.bf16.mxu0 %v2482_v29 }
 0x1da   :  { %1866 = vmatpush1.bf16.msra.mxu1 %v2477_v30  ;;  %1948 = vmatpush1.bf16.msra.mxu0 %v2480_v10 }
 0x1db   :  { %1867 = vmatprep.subr.bf16.mxu1 %v2485_v31  ;;  %1949 = vmatprep.subr.bf16.mxu0 %v2488_v41 }
 0x1de   :  { %1868 = vmatpush1.bf16.msra.mxu1 %v2483_v32  ;;  %1950 = vmatpush1.bf16.msra.mxu0 %v2486_v33 }
 0x1df   :  { %1869 = vmatprep.subr.bf16.mxu1 %v2491_v34  ;;  %1951 = vmatprep.subr.bf16.mxu0 %v2494_v37 }
 0x1e2   :  { %1870 = vmatpush1.bf16.msra.mxu1 %v2489_v39  ;;  %1952 = vmatpush1.bf16.msra.mxu0 %v2492_v40 }
 0x1e3   :  { %1871 = vmatprep.subr.bf16.mxu1 %v2497_v1  ;;  %1953 = vmatprep.subr.bf16.mxu0 %v2500_v55 }
 0x1e6   :  { %1872 = vmatpush1.bf16.msra.mxu1 %v2495_v56  ;;  %1954 = vmatpush1.bf16.msra.mxu0 %v2498_v46 }
 0x1e7   :  { %1873 = vmatprep.subr.bf16.mxu1 %v2503_v57  ;;  %1955 = vmatprep.subr.bf16.mxu0 %v2506_v58 }
 0x1ea   :  { %1874 = vmatpush1.bf16.msra.mxu1 %v2501_v44  ;;  %1956 = vmatpush1.bf16.msra.mxu0 %v2504_v23 }
 0x1eb   :  { %1875 = vmatprep.subr.bf16.mxu1 %v2509_v51  ;;  %1957 = vmatprep.subr.bf16.mxu0 %v2512_v15 }
 0x1ee   :  { %1876 = vmatpush1.bf16.msra.mxu1 %v2507_v50  ;;  %1958 = vmatpush1.bf16.msra.mxu0 %v2510_v59  ;;  %v1970_v59 = vld [vmem:[%s2923_s5] sm:$0x3] }
 0x1ef   :  { %1877 = vmatprep.subr.bf16.mxu1 %v2515_v60  ;;  %1959 = vmatprep.subr.bf16.mxu0 %v2518_v62 }
 0x1f2   :  { %1878 = vmatpush1.bf16.msra.mxu1 %v2513_v63  ;;  %1960 = vmatpush1.bf16.msra.mxu0 %v2516_v0 }
 0x1f5   :  { %1880 = vmatmul.mubr.bf16.vlgmr.msra.gmra.mrb[8].mxu1 %v1032_v8  ;;  %1962 = vmatmul.mubr.bf16.vlgmr.msra.gmra.mrb[8].mxu0 %v1036_v35 }
 0x2c8   :  { %v1881_v13 = vpop.f32.mrb[8].mxu1  ;;  %v1963_v16 = vpop.f32.mrb[8].mxu0 }
 0x2c9   :  { %v2307_v17 = vadd.f32 %v1963_v16, %v1881_v13  ;;  %v1883_v53 = vpop.f32.mrb[9].mxu1  ;;  %v1965_v18 = vpop.f32.mrb[9].mxu0 }
 0x2ca   :  { %v2308_v19 = vadd.f32 %v1965_v18, %v1883_v53  ;;  %v1885_v20 = vpop.f32.mrb[10].mxu1  ;;  %v1967_v43 = vpop.f32.mrb[10].mxu0  ;;  %v1971_v53 = vld [vmem:[%s2924_s6] sm:$0x3] }
 0x2cb   :  { %v1972_v49 = vrot.slane %v2307_v17, 4  ;;  %v1984_v48 = vmul.f32 %v2307_v17, %v2307_v17  ;;  %v1886_v12 = vpop.f32.mrb[11].mxu1  ;;  %v1968_v45 = vpop.f32.mrb[11].mxu0  ;;  %v2080_v43 = vld [vmem:[%s2925_s7] sm:$0x3] }
 0x2cc   :  { %v1978_v47 = vrot.slane %v2308_v19, 4  ;;  %v1985_v54 = vmul.f32 %v2308_v19, %v2308_v19  ;;  %v2085_v12 = vrot.slane %v2080_v43, %v2858_v52  ;;  %v2089_v45 = vrot.slane %v2080_v43, %v2861_v6 }
 0x2cd   :  { %v1973_v61 = vadd.f32 %v2307_v17, %v1972_v49  ;;  %v1986_v4 = vrot.slane %v1984_v48, 4 }
 0x2ce   :  { %v1979_v2 = vadd.f32 %v2308_v19, %v1978_v47  ;;  %v1992_v21 = vrot.slane %v1985_v54, 4 }
 0x2cf   :  { %v1974_v9 = vrot.slane %v1973_v61, 2  ;;  %v1987_v11 = vadd.f32 %v1986_v4, %v1984_v48 }
 0x2d0   :  { %v1980_v22 = vrot.slane %v1979_v2, 2  ;;  %v1993_v42 = vadd.f32 %v1992_v21, %v1985_v54 }
 0x2d1   :  { %v1975_v7 = vadd.f32 %v1974_v9, %v1973_v61  ;;  %v1988_v24 = vrot.slane %v1987_v11, 2 }
 0x2d2   :  { %v1981_v36 = vadd.f32 %v1980_v22, %v1979_v2  ;;  %v1994_v25 = vrot.slane %v1993_v42, 2  ;;  %v2306_v2 = vld [vmem:[#allocation2] ss:$0 sm:$0xff] }
 0x2d3   :  { %v1976_v26 = vrot.slane %v1975_v7, 1  ;;  %v1989_v27 = vadd.f32 %v1988_v24, %v1987_v11 }
 0x2d4   :  { %v1982_v28 = vrot.slane %v1981_v36, 1  ;;  %v1995_v14 = vadd.f32 %v1994_v25, %v1993_v42 }
 0x2d5   :  { %v1977_v29 = vadd.f32 %v1976_v26, %v1975_v7  ;;  %v1990_v30 = vrot.slane %v1989_v27, 1 }
 0x2d6   :  { %v1983_v10 = vadd.f32 %v1982_v28, %v1981_v36  ;;  %v1996_v31 = vrot.slane %v1995_v14, 1 }
 0x2d7   :  { %v1991_v41 = vadd.f32 %v1990_v30, %v1989_v27  ;;  %v1998_v32 = vmul.f32 0.125, %v1977_v29 }
 0x2d8   :  { %v1997_v33 = vadd.f32 %v1996_v31, %v1995_v14  ;;  %v1999_v34 = vmul.f32 0.125, %v1983_v10 }
 0x2d9   :  { %v2000_v37 = vmul.f32 0.125, %v1991_v41  ;;  %v2002_v39 = vmul.f32 %v1998_v32, %v1998_v32 }
 0x2da   :  { %v2001_v40 = vmul.f32 0.125, %v1997_v33  ;;  %v2003_v1 = vmul.f32 %v1999_v34, %v1999_v34 }
 0x2db   :  { %v2004_v55 = vsub.f32 %v2000_v37, %v2002_v39 }
 0x2dc   :  { %v2005_v56 = vsub.f32 %v2001_v40, %v2003_v1 }
 0x2dd   :  { %v2006_v46 = vmax.f32 %v2004_v55, 0.0 }
 0x2de   :  { %v2007_v57 = vmax.f32 %v2005_v56, 0.0 }
 0x2df   :  { %v2008_v58 = vadd.f32 1e-05, %v2006_v46 }
 0x2e0   :  { %v2009_v44 = vadd.f32 1e-05, %v2007_v57 }
 0x2e1   :  { %2535 = vrsqrt.f32 %v2008_v58 }
 0x2e2   :  { %2537 = vrsqrt.f32 %v2009_v44 }
 0x2eb   :  { %v2536_v23 = vpop.eup %2535 }
 0x2ec   :  { %v2538_v51 = vpop.eup %2537 }
 0x2ed   :  { %v2014_v15 = vcombine.low %v2536_v23, %v2538_v51 }
 0x2ef   :  { %v2021_v50 = vrot.slane %v2014_v15, %v2799_v38 }
 0x2f1   :  { %v2028_v60 = vrot.slane %v2021_v50, %v2799_v38 }
 0x2f3   :  { %v2030_v62 = vmul.f32 %v2028_v60, %v1970_v59 }
 0x2f5   :  { %v2035_v63 = vrot.slane %v2030_v62, %v2858_v52  ;;  %v2039_v0 = vrot.slane %v2030_v62, %v2861_v6 }
 0x2f7   :  { %v2042_v3 = vmul.f32 %v2035_v63, %v1998_v32  ;;  %v2043_v5 = vmul.f32 %v2039_v0, %v1999_v34  ;;  %v2063_v8 = vmul.f32 %v2307_v17, %v2035_v63  ;;  %v2064_v35 = vmul.f32 %v2308_v19, %v2039_v0 }
 0x2f9   :  { %v2046_v13 = vcombine.low %v2042_v3, %v2043_v5 }
 0x2fb   :  { %v2053_v16 = vrot.slane %v2046_v13, %v2799_v38 }
 0x2fd   :  { %v2060_v18 = vrot.slane %v2053_v16, %v2799_v38 }
 0x2ff   :  { %v2062_v20 = vsub.f32 %v1971_v53, %v2060_v18 }
 0x301   :  { %v2069_v49 = vrot.slane %v2062_v20, %v2858_v52  ;;  %v2073_v48 = vrot.slane %v2062_v20, %v2861_v6 }
 0x303   :  { %v2076_v17 = vadd.f32 %v2069_v49, %v2063_v8  ;;  %v2077_v19 = vadd.f32 %v2073_v48, %v2064_v35 }
 0x305   :  { %v2078_v47 = vmax.f32 %v2076_v17, 0.0  ;;  %v2079_v54 = vmax.f32 %v2077_v19, 0.0 }
 0x307   :  { %v2092_v61 = vmul.f32 %v2085_v12, %v2078_v47  ;;  %v2093_v4 = vmul.f32 %v2089_v45, %v2079_v54 }
 0x309   :  { %v2094_v38 = vadd.f32 %v2093_v4, %v2092_v61 }
 0x30b   :  { %2095 = vadd.xlane.f32.xlu0 %v2094_v38 }
 0x398   :  { %v2096_v21 = vpop.xlane.xlu0 %2095 }
 0x399   :  { %v2104_v9 = vadd.f32 %v2306_v2, %v2096_v21 }
 0x39b   :  { %2106 = vst.msk [vmem:[%s2927_s9] sm:$0xff] %vm2105_vm0, %v2104_v9 }
 0x39c   :  { %2111 = vsyncpa [#allocation4], 1 }
 0x39d   :  { %2112 = vsyncpa [#allocation6], 1 }
 0x39e   :  { %2113 = vsyncpa [#allocation9], 1 }

</bundles_post_ra>
